<compile_context>
chip_gen: v5e
topology: v5e:2x2
jax: 0.10.0
libtpu: 0.0.40
codegen_flags: <defaults>
</compile_context>

<pallas_src>
import functools
import math

import jax
import jax.numpy as jnp
from jax import lax
from jax.experimental import pallas as pl
from jax.experimental.pallas import tpu as pltpu


# ---------------------------------------------------------------------------
# Pallas kernel
# ---------------------------------------------------------------------------
def gated_attn_kernel(x_ref, posq_ref, win_ref, wg_ref, bg_ref, o_ref, *, num_heads):
    # x_ref:    (1, S, C)  bf16  input block for this batch element
    # posq_ref: (S, 3C)    f32   precomputed pos_enc @ W_in^T (q-scale folded in)
    # win_ref:  (C, 3C)    bf16  pre-transposed in_proj weight (cols = [k | v | q])
    # wg_ref:   (C, 2C)    bf16  pre-transposed gate weight
    # bg_ref:   (1, 2C)    f32   gate bias
    # o_ref:    (1, S, C)  f32   output block
    S = x_ref.shape[1]
    C = x_ref.shape[2]
    dh = C // num_heads

    x = x_ref[0]                                                       # (S, C) bf16

    # in_proj: x @ W_in (no transpose; q-scale already in the weight) + pos bias.
    qkv = jnp.dot(x, win_ref[...], preferred_element_type=jnp.float32)
    qkv = qkv + posq_ref[...]                                          # (S, 3C) f32

    head_outs = []
    for h in range(num_heads):                                         # static unroll
        k_h = qkv[:, h * dh:(h + 1) * dh].astype(jnp.bfloat16)         # (S, dh)
        v_h = qkv[:, C + h * dh:C + (h + 1) * dh].astype(jnp.bfloat16)
        q_h = qkv[:, 2 * C + h * dh:2 * C + (h + 1) * dh].astype(jnp.bfloat16)

        # scores = q_h @ k_h^T, expressed as last-vs-last contraction (no .T).
        s = lax.dot_general(q_h, k_h, (((1,), (1,)), ((), ())),
                            preferred_element_type=jnp.float32)        # (S, S)
        m = jnp.max(s, axis=-1, keepdims=True)
        p = jnp.exp(s - m)                                             # unnormalized
        denom = jnp.sum(p, axis=-1, keepdims=True)                     # (S, 1)

        av = jnp.dot(p.astype(jnp.bfloat16), v_h,
                     preferred_element_type=jnp.float32)               # (S, dh)
        # deferred softmax normalization (EUP reciprocal, applied to S*dh elems)
        head_outs.append(av * pl.reciprocal(denom, approx=True))

    attn = jnp.concatenate(head_outs, axis=-1).astype(jnp.bfloat16)    # (S, C)

    # gate: attn @ W_gate + b -> (S, 2C); out = a * sigmoid(b)
    g = jnp.dot(attn, wg_ref[...], preferred_element_type=jnp.float32)
    g = g + bg_ref[0]
    a = g[:, :C]
    b_gate = g[:, C:]
    o_ref[0] = (a * jax.nn.sigmoid(b_gate)).astype(o_ref.dtype)


# ---------------------------------------------------------------------------
# Glue: positional encoding, weight-norm materialization, wrapper
# ---------------------------------------------------------------------------
def positional_encoding(seq_len, num_channels):
    position = jnp.arange(seq_len, dtype=jnp.float32)
    num_timescales = num_channels // 2
    log_timescale_increment = math.log(10000.0) / (num_timescales - 1)
    inv_timescales = jnp.exp(
        jnp.arange(num_timescales, dtype=jnp.float32) * -log_timescale_increment)
    scaled_time = position[:, None] * inv_timescales[None, :]
    enc = jnp.concatenate([jnp.sin(scaled_time), jnp.cos(scaled_time)], axis=1)
    if num_channels % 2:
        enc = jnp.pad(enc, ((0, 0), (0, num_channels % 2)))
    return enc  # (S, C) float32


def weight_norm_weight(v, g):
    # PyTorch weight_norm(dim=0) for nn.Linear: W = g * v / ||v||_2 (norm per row)
    norm = jnp.sqrt(jnp.sum(v * v, axis=1, keepdims=True))
    return (g * v / norm).astype(jnp.float32)


def gated_attn(x, w_in, w_gate, b_gate, num_heads=4):
    """x: (B, H, W, C) float32 -> (B, H, W, C) float32"""
    B, H, W, C = x.shape
    S = H * W
    dh = C // num_heads

    x_flat = x.reshape(B, S, C).astype(jnp.bfloat16)

    # Fold the 1/sqrt(dh) query scale into the q rows (2C:3C) of the in_proj
    # weight, pre-transpose both weights, and precompute the positional bias.
    scale = jnp.concatenate([jnp.ones((2 * C,), jnp.float32),
                             jnp.full((C,), dh ** -0.5, jnp.float32)])
    w_in_t = (w_in * scale[:, None]).T                         # (C, 3C) f32
    pos_qkv = positional_encoding(S, C) @ w_in_t               # (S, 3C) f32 constant
    w_gate_t = w_gate.T                                        # (C, 2C) f32
    b_gate2d = b_gate.reshape(1, 2 * C).astype(jnp.float32)

    kernel = functools.partial(gated_attn_kernel, num_heads=num_heads)
    out = pl.pallas_call(
        kernel,
        out_shape=jax.ShapeDtypeStruct((B, S, C), jnp.float32),
        grid=(B,),
        in_specs=[
            pl.BlockSpec((1, S, C), lambda b: (b, 0, 0)),        # x (bf16)
            pl.BlockSpec((S, 3 * C), lambda b: (0, 0)),          # pos @ W_in (f32)
            pl.BlockSpec((C, 3 * C), lambda b: (0, 0)),          # in_proj^T (bf16)
            pl.BlockSpec((C, 2 * C), lambda b: (0, 0)),          # gate^T (bf16)
            pl.BlockSpec((1, 2 * C), lambda b: (0, 0)),          # gate bias (f32)
        ],
        out_specs=pl.BlockSpec((1, S, C), lambda b: (b, 0, 0)),
        compiler_params=pltpu.CompilerParams(
            dimension_semantics=("parallel",),
            vmem_limit_bytes=32 * 1024 * 1024),
    )(x_flat, pos_qkv, w_in_t.astype(jnp.bfloat16),
      w_gate_t.astype(jnp.bfloat16), b_gate2d)
    return out.reshape(B, H, W, C)


# ---------------------------------------------------------------------------
# Pure-JAX fp32 reference (mirrors the PyTorch forward) for a sanity check
# ---------------------------------------------------------------------------
def gated_attn_ref(x, w_in, w_gate, b_gate, num_heads=4):
    B, H, W, C = x.shape
    S = H * W
    dh = C // num_heads
    xf = x.reshape(B, S, C) + positional_encoding(S, C)[None]
    qkv = jnp.einsum('bsc,oc->bso', xf, w_in)
    k, v, q = qkv[..., :C], qkv[..., C:2 * C], qkv[..., 2 * C:]

    def heads(t):
        return jnp.transpose(t.reshape(B, S, num_heads, dh), (0, 2, 1, 3))

    qh, kh, vh = heads(q) * dh ** -0.5, heads(k), heads(v)
    w = jax.nn.softmax(jnp.einsum('bhqd,bhkd->bhqk', qh, kh), axis=-1)
    attn = jnp.einsum('bhqk,bhkd->bhqd', w, vh)
    attn = jnp.transpose(attn, (0, 2, 1, 3)).reshape(B, S, C)
    g = jnp.einsum('bsc,oc->bso', attn, w_gate) + b_gate
    a, bg = g[..., :C], g[..., C:]
    return (a * jax.nn.sigmoid(bg)).reshape(B, H, W, C)


# ---------------------------------------------------------------------------
if __name__ == "__main__":
    d_model = 32
    num_heads = 4
    B, H, W = 2, 8, 8

    key = jax.random.PRNGKey(0)
    k_x, k_vin, k_gin, k_vg, k_gg, k_bg = jax.random.split(key, 6)

    x = jax.random.normal(k_x, (B, H, W, d_model), dtype=jnp.float32)

    # weight_norm(nn.Linear(d_model, 3*d_model, bias=False)): v (3C, C), g (3C, 1)
    v_in = jax.random.normal(k_vin, (3 * d_model, d_model), jnp.float32) * 0.1
    g_in = 1.0 + 0.05 * jax.random.normal(k_gin, (3 * d_model, 1), jnp.float32)
    w_in = weight_norm_weight(v_in, g_in)

    # weight_norm(nn.Linear(d_model, 2*d_model)): v (2C, C), g (2C, 1), bias (2C,)
    v_gate = jax.random.normal(k_vg, (2 * d_model, d_model), jnp.float32) * 0.1
    g_gate = 1.0 + 0.05 * jax.random.normal(k_gg, (2 * d_model, 1), jnp.float32)
    w_gate = weight_norm_weight(v_gate, g_gate)
    b_gate = 0.1 * jax.random.normal(k_bg, (2 * d_model,), jnp.float32)

    out = gated_attn(x, w_in, w_gate, b_gate, num_heads=num_heads)
    out = jax.block_until_ready(out)

    ref = gated_attn_ref(x, w_in, w_gate, b_gate, num_heads=num_heads)
    assert out.shape == (B, H, W, d_model)
    # bf16 MXU operands (fp32 accumulation) vs fp32 reference: agreement is at the
    # ~1e-2 level; threshold has margin but still catches any semantic error.
    max_err = float(jnp.max(jnp.abs(out - ref)))
    assert max_err < 1e-1, f"mismatch vs JAX reference (max abs err {max_err})"

    print("KERNEL_OK")
</pallas_src>

<mosaic_0001>
module attributes {stable_mosaic.version = 11 : i64} {
  func.func @gated_attn_kernel(%arg0: i32, %arg1: memref<1x64x32xbf16, #tpu.memory_space<vmem>>, %arg2: memref<64x96xf32, #tpu.memory_space<vmem>>, %arg3: memref<32x96xbf16, #tpu.memory_space<vmem>>, %arg4: memref<32x64xbf16, #tpu.memory_space<vmem>>, %arg5: memref<1x64xf32, #tpu.memory_space<vmem>>, %arg6: memref<1x64x32xf32, #tpu.memory_space<vmem>>) attributes {dimension_semantics = [#tpu.dimension_semantics<parallel>], iteration_bounds = array<i64: 2>, scalar_prefetch = 0 : i64, scratch_operands = 0 : i64, tpu.core_type = #tpu.core_type<tc>, window_params = [{transform_indices = @transform_0, window_bounds = array<i64: 1, 64, 32>}, {pipeline_mode = #tpu.pipeline_mode<synchronous>, transform_indices = @transform_1, window_bounds = array<i64: 64, 96>}, {pipeline_mode = #tpu.pipeline_mode<synchronous>, transform_indices = @transform_2, window_bounds = array<i64: 32, 96>}, {pipeline_mode = #tpu.pipeline_mode<synchronous>, transform_indices = @transform_3, window_bounds = array<i64: 32, 64>}, {pipeline_mode = #tpu.pipeline_mode<synchronous>, transform_indices = @transform_4, window_bounds = array<i64: 1, 64>}, {transform_indices = @transform_5, window_bounds = array<i64: 1, 64, 32>}]} {
    %c0 = arith.constant 0 : index
    %c0_0 = arith.constant 0 : index
    %c0_1 = arith.constant 0 : index
    %0 = vector.load %arg1[%c0, %c0_0, %c0_1] : memref<1x64x32xbf16, #tpu.memory_space<vmem>>, vector<1x64x32xbf16>
    %1 = vector.shape_cast %0 : vector<1x64x32xbf16> to vector<64x32xbf16>
    %c0_2 = arith.constant 0 : index
    %c0_3 = arith.constant 0 : index
    %2 = vector.load %arg3[%c0_2, %c0_3] : memref<32x96xbf16, #tpu.memory_space<vmem>>, vector<32x96xbf16>
    %cst = arith.constant dense<0.000000e+00> : vector<64x96xf32>
    %3 = tpu.matmul %1, %2, %cst {dimension_numbers = #tpu.dot_dimension_numbers<[1], [0], [0], [1], [0, 0, 1, 1], [], []>} : vector<64x32xbf16>, vector<32x96xbf16>, vector<64x96xf32> -> vector<64x96xf32>
    %c0_4 = arith.constant 0 : index
    %c0_5 = arith.constant 0 : index
    %4 = vector.load %arg2[%c0_4, %c0_5] : memref<64x96xf32, #tpu.memory_space<vmem>>, vector<64x96xf32>
    %5 = arith.addf %3, %4 : vector<64x96xf32>
    %6 = vector.extract_strided_slice %5 {offsets = [0, 0], sizes = [64, 8], strides = [1, 1]} : vector<64x96xf32> to vector<64x8xf32>
    %7 = arith.truncf %6 : vector<64x8xf32> to vector<64x8xbf16>
    %8 = vector.extract_strided_slice %5 {offsets = [0, 32], sizes = [64, 8], strides = [1, 1]} : vector<64x96xf32> to vector<64x8xf32>
    %9 = arith.truncf %8 : vector<64x8xf32> to vector<64x8xbf16>
    %10 = vector.extract_strided_slice %5 {offsets = [0, 64], sizes = [64, 8], strides = [1, 1]} : vector<64x96xf32> to vector<64x8xf32>
    %11 = arith.truncf %10 : vector<64x8xf32> to vector<64x8xbf16>
    %cst_6 = arith.constant dense<0.000000e+00> : vector<64x64xf32>
    %12 = tpu.matmul %11, %7, %cst_6 {dimension_numbers = #tpu.dot_dimension_numbers<[1], [1], [0], [0], [0, 0, 1, 0], [], []>} : vector<64x8xbf16>, vector<64x8xbf16>, vector<64x64xf32> -> vector<64x64xf32>
    %cst_7 = arith.constant dense<0xFF800000> : vector<64xf32>
    %13 = vector.multi_reduction <maximumf>, %12, %cst_7 [1] : vector<64x64xf32> to vector<64xf32>
    %14 = vector.shape_cast %13 : vector<64xf32> to vector<64x1xf32>
    %15 = vector.broadcast %14 : vector<64x1xf32> to vector<64x64xf32>
    %16 = arith.subf %12, %15 : vector<64x64xf32>
    %17 = math.exp %16 : vector<64x64xf32>
    %cst_8 = arith.constant dense<0.000000e+00> : vector<64xf32>
    %18 = vector.multi_reduction <add>, %17, %cst_8 [1] : vector<64x64xf32> to vector<64xf32>
    %19 = vector.shape_cast %18 : vector<64xf32> to vector<64x1xf32>
    %20 = arith.truncf %17 : vector<64x64xf32> to vector<64x64xbf16>
    %cst_9 = arith.constant dense<0.000000e+00> : vector<64x8xf32>
    %21 = tpu.matmul %20, %9, %cst_9 {dimension_numbers = #tpu.dot_dimension_numbers<[1], [0], [0], [1], [0, 0, 1, 1], [], []>} : vector<64x64xbf16>, vector<64x8xbf16>, vector<64x8xf32> -> vector<64x8xf32>
    %22 = tpu.reciprocal %19 {approx = true} : vector<64x1xf32> -> vector<64x1xf32>
    %23 = vector.broadcast %22 : vector<64x1xf32> to vector<64x8xf32>
    %24 = arith.mulf %21, %23 : vector<64x8xf32>
    %25 = vector.extract_strided_slice %5 {offsets = [0, 8], sizes = [64, 8], strides = [1, 1]} : vector<64x96xf32> to vector<64x8xf32>
    %26 = arith.truncf %25 : vector<64x8xf32> to vector<64x8xbf16>
    %27 = vector.extract_strided_slice %5 {offsets = [0, 40], sizes = [64, 8], strides = [1, 1]} : vector<64x96xf32> to vector<64x8xf32>
    %28 = arith.truncf %27 : vector<64x8xf32> to vector<64x8xbf16>
    %29 = vector.extract_strided_slice %5 {offsets = [0, 72], sizes = [64, 8], strides = [1, 1]} : vector<64x96xf32> to vector<64x8xf32>
    %30 = arith.truncf %29 : vector<64x8xf32> to vector<64x8xbf16>
    %cst_10 = arith.constant dense<0.000000e+00> : vector<64x64xf32>
    %31 = tpu.matmul %30, %26, %cst_10 {dimension_numbers = #tpu.dot_dimension_numbers<[1], [1], [0], [0], [0, 0, 1, 0], [], []>} : vector<64x8xbf16>, vector<64x8xbf16>, vector<64x64xf32> -> vector<64x64xf32>
    %cst_11 = arith.constant dense<0xFF800000> : vector<64xf32>
    %32 = vector.multi_reduction <maximumf>, %31, %cst_11 [1] : vector<64x64xf32> to vector<64xf32>
    %33 = vector.shape_cast %32 : vector<64xf32> to vector<64x1xf32>
    %34 = vector.broadcast %33 : vector<64x1xf32> to vector<64x64xf32>
    %35 = arith.subf %31, %34 : vector<64x64xf32>
    %36 = math.exp %35 : vector<64x64xf32>
    %cst_12 = arith.constant dense<0.000000e+00> : vector<64xf32>
    %37 = vector.multi_reduction <add>, %36, %cst_12 [1] : vector<64x64xf32> to vector<64xf32>
    %38 = vector.shape_cast %37 : vector<64xf32> to vector<64x1xf32>
    %39 = arith.truncf %36 : vector<64x64xf32> to vector<64x64xbf16>
    %cst_13 = arith.constant dense<0.000000e+00> : vector<64x8xf32>
    %40 = tpu.matmul %39, %28, %cst_13 {dimension_numbers = #tpu.dot_dimension_numbers<[1], [0], [0], [1], [0, 0, 1, 1], [], []>} : vector<64x64xbf16>, vector<64x8xbf16>, vector<64x8xf32> -> vector<64x8xf32>
    %41 = tpu.reciprocal %38 {approx = true} : vector<64x1xf32> -> vector<64x1xf32>
    %42 = vector.broadcast %41 : vector<64x1xf32> to vector<64x8xf32>
    %43 = arith.mulf %40, %42 : vector<64x8xf32>
    %44 = vector.extract_strided_slice %5 {offsets = [0, 16], sizes = [64, 8], strides = [1, 1]} : vector<64x96xf32> to vector<64x8xf32>
    %45 = arith.truncf %44 : vector<64x8xf32> to vector<64x8xbf16>
    %46 = vector.extract_strided_slice %5 {offsets = [0, 48], sizes = [64, 8], strides = [1, 1]} : vector<64x96xf32> to vector<64x8xf32>
    %47 = arith.truncf %46 : vector<64x8xf32> to vector<64x8xbf16>
    %48 = vector.extract_strided_slice %5 {offsets = [0, 80], sizes = [64, 8], strides = [1, 1]} : vector<64x96xf32> to vector<64x8xf32>
    %49 = arith.truncf %48 : vector<64x8xf32> to vector<64x8xbf16>
    %cst_14 = arith.constant dense<0.000000e+00> : vector<64x64xf32>
    %50 = tpu.matmul %49, %45, %cst_14 {dimension_numbers = #tpu.dot_dimension_numbers<[1], [1], [0], [0], [0, 0, 1, 0], [], []>} : vector<64x8xbf16>, vector<64x8xbf16>, vector<64x64xf32> -> vector<64x64xf32>
    %cst_15 = arith.constant dense<0xFF800000> : vector<64xf32>
    %51 = vector.multi_reduction <maximumf>, %50, %cst_15 [1] : vector<64x64xf32> to vector<64xf32>
    %52 = vector.shape_cast %51 : vector<64xf32> to vector<64x1xf32>
    %53 = vector.broadcast %52 : vector<64x1xf32> to vector<64x64xf32>
    %54 = arith.subf %50, %53 : vector<64x64xf32>
    %55 = math.exp %54 : vector<64x64xf32>
    %cst_16 = arith.constant dense<0.000000e+00> : vector<64xf32>
    %56 = vector.multi_reduction <add>, %55, %cst_16 [1] : vector<64x64xf32> to vector<64xf32>
    %57 = vector.shape_cast %56 : vector<64xf32> to vector<64x1xf32>
    %58 = arith.truncf %55 : vector<64x64xf32> to vector<64x64xbf16>
    %cst_17 = arith.constant dense<0.000000e+00> : vector<64x8xf32>
    %59 = tpu.matmul %58, %47, %cst_17 {dimension_numbers = #tpu.dot_dimension_numbers<[1], [0], [0], [1], [0, 0, 1, 1], [], []>} : vector<64x64xbf16>, vector<64x8xbf16>, vector<64x8xf32> -> vector<64x8xf32>
    %60 = tpu.reciprocal %57 {approx = true} : vector<64x1xf32> -> vector<64x1xf32>
    %61 = vector.broadcast %60 : vector<64x1xf32> to vector<64x8xf32>
    %62 = arith.mulf %59, %61 : vector<64x8xf32>
    %63 = vector.extract_strided_slice %5 {offsets = [0, 24], sizes = [64, 8], strides = [1, 1]} : vector<64x96xf32> to vector<64x8xf32>
    %64 = arith.truncf %63 : vector<64x8xf32> to vector<64x8xbf16>
    %65 = vector.extract_strided_slice %5 {offsets = [0, 56], sizes = [64, 8], strides = [1, 1]} : vector<64x96xf32> to vector<64x8xf32>
    %66 = arith.truncf %65 : vector<64x8xf32> to vector<64x8xbf16>
    %67 = vector.extract_strided_slice %5 {offsets = [0, 88], sizes = [64, 8], strides = [1, 1]} : vector<64x96xf32> to vector<64x8xf32>
    %68 = arith.truncf %67 : vector<64x8xf32> to vector<64x8xbf16>
    %cst_18 = arith.constant dense<0.000000e+00> : vector<64x64xf32>
    %69 = tpu.matmul %68, %64, %cst_18 {dimension_numbers = #tpu.dot_dimension_numbers<[1], [1], [0], [0], [0, 0, 1, 0], [], []>} : vector<64x8xbf16>, vector<64x8xbf16>, vector<64x64xf32> -> vector<64x64xf32>
    %cst_19 = arith.constant dense<0xFF800000> : vector<64xf32>
    %70 = vector.multi_reduction <maximumf>, %69, %cst_19 [1] : vector<64x64xf32> to vector<64xf32>
    %71 = vector.shape_cast %70 : vector<64xf32> to vector<64x1xf32>
    %72 = vector.broadcast %71 : vector<64x1xf32> to vector<64x64xf32>
    %73 = arith.subf %69, %72 : vector<64x64xf32>
    %74 = math.exp %73 : vector<64x64xf32>
    %cst_20 = arith.constant dense<0.000000e+00> : vector<64xf32>
    %75 = vector.multi_reduction <add>, %74, %cst_20 [1] : vector<64x64xf32> to vector<64xf32>
    %76 = vector.shape_cast %75 : vector<64xf32> to vector<64x1xf32>
    %77 = arith.truncf %74 : vector<64x64xf32> to vector<64x64xbf16>
    %cst_21 = arith.constant dense<0.000000e+00> : vector<64x8xf32>
    %78 = tpu.matmul %77, %66, %cst_21 {dimension_numbers = #tpu.dot_dimension_numbers<[1], [0], [0], [1], [0, 0, 1, 1], [], []>} : vector<64x64xbf16>, vector<64x8xbf16>, vector<64x8xf32> -> vector<64x8xf32>
    %79 = tpu.reciprocal %76 {approx = true} : vector<64x1xf32> -> vector<64x1xf32>
    %80 = vector.broadcast %79 : vector<64x1xf32> to vector<64x8xf32>
    %81 = arith.mulf %78, %80 : vector<64x8xf32>
    %82 = tpu.concatenate %24, %43, %62, %81 in 1 : vector<64x8xf32>, vector<64x8xf32>, vector<64x8xf32>, vector<64x8xf32> -> vector<64x32xf32>
    %83 = arith.truncf %82 : vector<64x32xf32> to vector<64x32xbf16>
    %c0_22 = arith.constant 0 : index
    %c0_23 = arith.constant 0 : index
    %84 = vector.load %arg4[%c0_22, %c0_23] : memref<32x64xbf16, #tpu.memory_space<vmem>>, vector<32x64xbf16>
    %cst_24 = arith.constant dense<0.000000e+00> : vector<64x64xf32>
    %85 = tpu.matmul %83, %84, %cst_24 {dimension_numbers = #tpu.dot_dimension_numbers<[1], [0], [0], [1], [0, 0, 1, 1], [], []>} : vector<64x32xbf16>, vector<32x64xbf16>, vector<64x64xf32> -> vector<64x64xf32>
    %c0_25 = arith.constant 0 : index
    %c0_26 = arith.constant 0 : index
    %86 = vector.load %arg5[%c0_25, %c0_26] : memref<1x64xf32, #tpu.memory_space<vmem>>, vector<1x64xf32>
    %87 = vector.shape_cast %86 : vector<1x64xf32> to vector<64xf32>
    %88 = vector.shape_cast %87 : vector<64xf32> to vector<1x64xf32>
    %89 = vector.broadcast %88 : vector<1x64xf32> to vector<64x64xf32>
    %90 = arith.addf %85, %89 : vector<64x64xf32>
    %91 = vector.extract_strided_slice %90 {offsets = [0, 0], sizes = [64, 32], strides = [1, 1]} : vector<64x64xf32> to vector<64x32xf32>
    %92 = vector.extract_strided_slice %90 {offsets = [0, 32], sizes = [64, 32], strides = [1, 1]} : vector<64x64xf32> to vector<64x32xf32>
    %93 = arith.negf %92 : vector<64x32xf32>
    %94 = math.exp %93 : vector<64x32xf32>
    %cst_27 = arith.constant 1.000000e+00 : f32
    %95 = vector.broadcast %cst_27 : f32 to vector<64x32xf32>
    %96 = arith.addf %95, %94 : vector<64x32xf32>
    %97 = arith.divf %95, %96 : vector<64x32xf32>
    %98 = arith.mulf %91, %97 : vector<64x32xf32>
    %c0_28 = arith.constant 0 : index
    %c0_29 = arith.constant 0 : index
    %c0_30 = arith.constant 0 : index
    %99 = vector.load %arg6[%c0_28, %c0_29, %c0_30] : memref<1x64x32xf32, #tpu.memory_space<vmem>>, vector<1x64x32xf32>
    %100 = vector.shape_cast %99 : vector<1x64x32xf32> to vector<64x32xf32>
    %101 = vector.shape_cast %98 : vector<64x32xf32> to vector<1x64x32xf32>
    tpu.vector_store %arg6[%c0_28, %c0_29, %c0_30], %101 {strides = array<i32>} : memref<1x64x32xf32, #tpu.memory_space<vmem>>, vector<1x64x32xf32>,
    return
  }
  func.func @transform_0(%arg0: i32) -> (i32, i32, i32) {
    %c0_i32 = arith.constant 0 : i32
    %c0_i32_0 = arith.constant 0 : i32
    %c0_i32_1 = arith.constant 0 : i32
    return %arg0, %c0_i32, %c0_i32_0 : i32, i32, i32
  }
  func.func @transform_1(%arg0: i32) -> (i32, i32) {
    %c0_i32 = arith.constant 0 : i32
    %c0_i32_0 = arith.constant 0 : i32
    %c0_i32_1 = arith.constant 0 : i32
    return %c0_i32, %c0_i32_0 : i32, i32
  }
  func.func @transform_2(%arg0: i32) -> (i32, i32) {
    %c0_i32 = arith.constant 0 : i32
    %c0_i32_0 = arith.constant 0 : i32
    %c0_i32_1 = arith.constant 0 : i32
    return %c0_i32, %c0_i32_0 : i32, i32
  }
  func.func @transform_3(%arg0: i32) -> (i32, i32) {
    %c0_i32 = arith.constant 0 : i32
    %c0_i32_0 = arith.constant 0 : i32
    %c0_i32_1 = arith.constant 0 : i32
    return %c0_i32, %c0_i32_0 : i32, i32
  }
  func.func @transform_4(%arg0: i32) -> (i32, i32) {
    %c0_i32 = arith.constant 0 : i32
    %c0_i32_0 = arith.constant 0 : i32
    %c0_i32_1 = arith.constant 0 : i32
    return %c0_i32, %c0_i32_0 : i32, i32
  }
  func.func @transform_5(%arg0: i32) -> (i32, i32, i32) {
    %c0_i32 = arith.constant 0 : i32
    %c0_i32_0 = arith.constant 0 : i32
    %c0_i32_1 = arith.constant 0 : i32
    return %arg0, %c0_i32, %c0_i32_0 : i32, i32, i32
  }
}

</mosaic_0001>

<bundles_post_ra>
// kernel: tpu_custom_call.1
= control target key start
LH: loop header
LB: loop body
LE: loop exit
PB: predicated region body
PF: predicated region fallthrough
CT: control target
= control target key end

     0   :  { %s2026_s18 = smov 0   ;;  %s2660_s0 = inlined_call_operand.vmem [shape: bf16[2,64,32], index: 0, kind: input, shape index: {}]   ;;  %s2661_s1 = inlined_call_operand.vmem [shape: f32[64,96], index: 1, kind: input, shape index: {}]   ;;  %s2662_s2 = inlined_call_operand.vmem [shape: bf16[32,96], index: 2, kind: input, shape index: {}]   ;;  %s2663_s3 = inlined_call_operand.vmem [shape: bf16[32,64], index: 3, kind: input, shape index: {}]   ;;  %s2664_s4 = inlined_call_operand.vmem [shape: f32[1,64], index: 4, kind: input, shape index: {}]   ;;  %s2665_s5 = inlined_call_operand.vmem [shape: f32[2,64,32], index: 5, kind: output, shape index: {}]  }
   0x1 LB: > { %s1620_s19 = sadd.s32 4294967295, %s1980_s18   ;;  %p1624_p0 = scmp.ge.s32.totalorder %s1980_s18, 1  ;;  %s1980_s18 = sphi %s2026_s18, %s15_s18  }
   0x2   : > { %p187_p1 = scmp.lt.s32.totalorder %s1980_s18, 3 }
   0x4   : > { %p188_p2 = pnand %p1624_p0, %p187_p1 }
   0x5   : > { %p215_p3 = scmp.lt.s32.totalorder (!%p188_p2), %s1620_s19, 1  ;;  %s1982_s11 = smov (!%p188_p2), 64  }
   0x6   : > { %191 = sbr.rel (%p188_p2) target bundleno = 1757 (0x6dd), region = 40  ;;  %s1983_s16 = smov (!%p188_p2), 120  }
   0x7   : > { %s1984_s17 = smov (!%p188_p2), 112   ;;  %s1985_s22 = smov (!%p188_p2), 56  }
   0x8   : > { %s1986_s25 = smov (!%p188_p2), 104   ;;  %s1987_s26 = smov (!%p188_p2), 96  }
   0x9   : > { %s1989_s28 = smov (!%p188_p2), 40   ;;  %s1990_s29 = smov (!%p188_p2), 88  }
   0xa   : > { %s1991_s30 = smov (!%p188_p2), 72   ;;  %s1992_s6 = smov (!%p188_p2), 80  }
   0xb   : > { %v1718_v0 = vld [vmem:[%s2662_s2 + $0x8] sm:$0xff]  ;;  %v1717_v1 = vld [vmem:[%s2662_s2] sm:$0xff]  ;;  %s2667_s19 = smov (!%p215_p3, %s1620_s19), 1  ;;  %vm278_vm0 = vcmask 261120   ;;  %v240_v13 = vld [vmem:[%s2661_s1 + $0x10] sm:$0xff]  ;;  %vm336_vm1 = vcmask 64512  }
   0xc   : > { %297 = vmatpush.bf16.msra.mxu0 %v1718_v0  ;;  %1721 = vmatpush.bf16.msra.mxu3 %v1718_v0  ;;  %s1711_s24 = sshll.u32 %s2667_s19, 5  ;;  %v238_v7 = vld [vmem:[%s2661_s1] sm:$0xff]  ;;  %v239_v9 = vld [vmem:[%s2661_s1 + $0x8] sm:$0xff]  ;;  %v241_v15 = vld [vmem:[%s2661_s1 + $0x18] sm:$0xff]  ;;  %vm390_vm2 = vcmask 523264   ;;  %s1993_s7 = smov 8  }
   0xd   : > { %s219_s27 = scalar_lea.vmem %s2660_s0, %s1711_s24  ;;  %v242_v21 = vld [vmem:[%s2661_s1 + $0x20] sm:$0xff]  ;;  %v243_v22 = vld [vmem:[%s2661_s1 + $0x28] sm:$0xff]  ;;  %v244_v28 = vld [vmem:[%s2661_s1 + $0x30] sm:$0xff]  ;;  %s1994_s8 = smov 24   ;;  %vm1282_vm3 = vcmask 130048   ;;  %vm1291_vm4 = vcmask 195584  }
   0xe   : > { %v1713_v2 = vld [vmem:[%s219_s27] sm:$0xff]  ;;  %v1714_v3 = vld [vmem:[%s219_s27 + $0x8] sm:$0xff]  ;;  %v1715_v4 = vld [vmem:[%s219_s27 + $0x10] sm:$0xff]  ;;  %s1995_s9 = smov 16  }
   0xf   : > { %v1716_v5 = vld [vmem:[%s219_s27 + $0x18] sm:$0xff]  ;;  %s1988_s27 = smov 48  }
  0x10   : > { %298 = vmatpush.bf16.msra.mxu0 %v1717_v1  ;;  %1722 = vmatpush.bf16.msra.mxu3 %v1717_v1  ;;  %v245_v29 = vld [vmem:[%s2661_s1 + $0x38] sm:$0xff] }
  0x13   : > { %1653 = vmatmul.msk.bf16.vlgmr.msra.gmra.mxu0 %vm278_vm0, %v1713_v2  ;;  %1654 = vmatmul.msk.bf16.vlgmr.msra.gmra.mxu3 %vm278_vm0, %v1714_v3 }
  0x23   : > { %1655 = vmatmul.msk.bf16.gmra.mxu3 %vm278_vm0, %v1715_v4 }
  0x33   : > { %1656 = vmatmul.msk.bf16.gmra.mxu3 %vm278_vm0, %v1716_v5 }
  0x90   : > { %v300_v6 = vpop.f32.mrf.mxu0 }
  0x91   : > { %v301_v11 = vadd.f32 %v300_v6, %v238_v7 }
  0x96   : > { %v305_v8 = vpop.f32.mrf.mxu3 }
  0x97   : > { %v306_v16 = vadd.f32 %v305_v8, %v240_v13 }
  0x98   : > { %v302_v10 = vpop.f32.mrf.mxu0 }
  0x99   : > { %v303_v12 = vadd.f32 %v302_v10, %v239_v9 }
  0x9b   : > { %v2059_v14 = vpack.c.bf16 %v303_v12, %v301_v11 }
  0x9d   : > { %328 = vrot.lane.b32.xlu0 %v2059_v14, %s1982_s11  ;;  %v350_v37 = vsel %vm336_vm1, %v2059_v14, 0 }
  0x9e   : > { %v307_v17 = vpop.f32.mrf.mxu3 }
  0x9f   : > { %v308_v18 = vadd.f32 %v307_v17, %v241_v15 }
  0xa1   : > { %v2065_v19 = vpack.c.bf16 %v308_v18, %v306_v16 }
  0xa3   : > { %v353_v36 = vsel %vm336_vm1, %v2065_v19, 0 }
  0xa5   : > { %330 = vrot.lane.b32.xlu0 %v2065_v19, %s1982_s11 }
  0xa6   : > { %v310_v20 = vpop.f32.mrf.mxu3 }
  0xa7   : > { %v311_v23 = vadd.f32 %v310_v20, %v242_v21 }
  0xad   : > { %546 = vrot.lane.b32.xlu0 %v2065_v19, %s1983_s16 }
  0xae   : > { %v312_v24 = vpop.f32.mrf.mxu3 }
  0xaf   : > { %v313_v25 = vadd.f32 %v312_v24, %v243_v22 }
  0xb1   : > { %v2076_v26 = vpack.c.bf16 %v313_v25, %v311_v23 }
  0xb3   : > { %548 = vrot.lane.b32.xlu2 %v2076_v26, %s1983_s16  ;;  %332 = vrot.lane.b32.xlu1 %v2076_v26, %s1982_s11  ;;  %v356_v35 = vsel %vm336_vm1, %v2076_v26, 0 }
  0xb5   : > { %762 = vrot.lane.b32.xlu0 %v2076_v26, %s1984_s17 }
  0xb6   : > { %v315_v27 = vpop.f32.mrf.mxu3 }
  0xb7   : > { %v316_v30 = vadd.f32 %v315_v27, %v244_v28 }
  0xbb   : > { %536 = vrot.lane.b32.xlu2 %v2059_v14, %s1985_s22 }
  0xbd   : > { %758 = vrot.lane.b32.xlu0 %v2059_v14, %s1984_s17 }
  0xbe   : > { %v317_v31 = vpop.f32.mrf.mxu3 }
  0xbf   : > { %v318_v32 = vadd.f32 %v317_v31, %v245_v29 }
  0xc1   : > { %v2093_v33 = vpack.c.bf16 %v318_v32, %v316_v30 }
  0xc3   : > { %334 = vrot.lane.b32.xlu1 %v2093_v33, %s1982_s11  ;;  %976 = vrot.lane.b32.xlu2 %v2076_v26, %s1986_s25  ;;  %v359_v34 = vsel %vm336_vm1, %v2093_v33, 0 }
  0xc4   : > { %365 = vmatpush.bf16.xpose.msra.mxu1 %v359_v34 }
  0xc5   : > { %473 = vrot.lane.b32.xlu0 %v2093_v33, %s1987_s26 }
  0xcb   : > { %760 = vrot.lane.b32.xlu2 %v2065_v19, %s1984_s17  ;;  %544 = vrot.lane.b32.xlu1 %v2059_v14, %s1983_s16 }
  0xcc   : > { %366 = vmatpush.bf16.xpose.msra.mxu1 %v356_v35 }
  0xcd   : > { %542 = vrot.lane.b32.xlu0 %v2093_v33, %s1985_s22 }
  0xd3   : > { %974 = vrot.lane.b32.xlu2 %v2065_v19, %s1986_s25  ;;  %538 = vrot.lane.b32.xlu1 %v2065_v19, %s1985_s22 }
  0xd4   : > { %367 = vmatpush.bf16.xpose.msra.mxu1 %v353_v36 }
  0xdb   : > { %972 = vrot.lane.b32.xlu2 %v2059_v14, %s1986_s25  ;;  %471 = vrot.lane.b32.xlu1 %v2076_v26, %s1987_s26 }
  0xdc   : > { %368 = vmatpush.bf16.xpose.msra.mxu1 %v350_v37 }
  0xe3   : > { %550 = vrot.lane.b32.xlu2 %v2093_v33, %s1983_s16  ;;  %469 = vrot.lane.b32.xlu1 %v2065_v19, %s1987_s26  ;;  %s1712_s16 = sshll.u32 %s2667_s19, 6 }
  0xe4   : > { %s224_s21 = scalar_lea.vmem %s2665_s5, %s1712_s16 }
  0xeb   : > { %978 = vrot.lane.b32.xlu2 %v2093_v33, %s1986_s25  ;;  %467 = vrot.lane.b32.xlu1 %v2059_v14, %s1987_s26 }
  0xf3   : > { %540 = vrot.lane.b32.xlu1 %v2076_v26, %s1985_s22 }
  0xfb   : > { %764 = vrot.lane.b32.xlu1 %v2093_v33, %s1984_s17 }
 0x10d   : > { %v549_v38 = vpop.permute.xlu2 %548 }
 0x10e   : > { %v571_v56 = vsel %vm336_vm1, %v549_v38, 0 }
 0x10f   : > { %v329_v39 = vpop.permute.xlu0 %328 }
 0x110   : > { %1657 = vmatmul.msk.bf16.vlgmr.msra.gmra.mxu1 %vm336_vm1, %v329_v39 }
 0x115   : > { %v537_v40 = vpop.permute.xlu2 %536 }
 0x117   : > { %v331_v41 = vpop.permute.xlu0 %330 }
 0x11d   : > { %v977_v42 = vpop.permute.xlu2 %976 }
 0x11e   : > { %v999_v0 = vsel %vm336_vm1, %v977_v42, 0 }
 0x11f   : > { %v547_v43 = vpop.permute.xlu0 %546 }
 0x120   : > { %1658 = vmatmul.msk.bf16.gmra.mxu1 %vm336_vm1, %v331_v41  ;;  %v568_v58 = vsel %vm336_vm1, %v547_v43, 0 }
 0x125   : > { %v761_v44 = vpop.permute.xlu2 %760  ;;  %v333_v46 = vpop.permute.xlu1 %332 }
 0x126   : > { %v782_v7 = vsel %vm336_vm1, %v761_v44, 0 }
 0x127   : > { %v763_v45 = vpop.permute.xlu0 %762 }
 0x128   : > { %v785_v6 = vsel %vm336_vm1, %v763_v45, 0 }
 0x12d   : > { %v975_v47 = vpop.permute.xlu2 %974 }
 0x12e   : > { %v996_v2 = vsel %vm336_vm1, %v975_v47, 0 }
 0x12f   : > { %v759_v48 = vpop.permute.xlu0 %758 }
 0x130   : > { %1659 = vmatmul.msk.bf16.gmra.mxu1 %vm336_vm1, %v333_v46  ;;  %v779_v8 = vsel %vm336_vm1, %v759_v48, 0 }
 0x135   : > { %v335_v49 = vpop.permute.xlu1 %334  ;;  %v973_v50 = vpop.permute.xlu2 %972 }
 0x136   : > { %v993_v5 = vsel %vm336_vm1, %v973_v50, 0 }
 0x137   : > { %v474_v51 = vpop.permute.xlu0 %473 }
 0x138   : > { %495 = vmatpush.bf16.msrb.mxu0 %v474_v51  ;;  %1723 = vmatpush.bf16.msrb.mxu1 %v474_v51 }
 0x139   : > { %1724 = vmatpush.bf16.msra.mxu2 %v474_v51 }
 0x13d   : > { %v551_v52 = vpop.permute.xlu2 %550  ;;  %v545_v53 = vpop.permute.xlu1 %544 }
 0x13e   : > { %v574_v54 = vsel %vm336_vm1, %v551_v52, 0  ;;  %v565_v61 = vsel %vm336_vm1, %v545_v53, 0 }
 0x13f   : > { %580 = vmatpush.bf16.xpose.msrb.mxu3 %v574_v54  ;;  %v543_v10 = vpop.permute.xlu0 %542 }
 0x140   : > { %1660 = vmatmul.msk.bf16.gmra.mxu1 %vm336_vm1, %v335_v49 }
 0x145   : > { %v539_v55 = vpop.permute.xlu1 %538  ;;  %v979_v59 = vpop.permute.xlu2 %978 }
 0x146   : > { %v1002_v62 = vsel %vm336_vm1, %v979_v59, 0 }
 0x147   : > { %581 = vmatpush.bf16.xpose.msrb.mxu3 %v571_v56 }
 0x14d   : > { %v472_v57 = vpop.permute.xlu1 %471 }
 0x14e   : > { %496 = vmatpush.bf16.msrb.mxu0 %v472_v57  ;;  %1725 = vmatpush.bf16.msrb.mxu1 %v472_v57 }
 0x14f   : > { %1726 = vmatpush.bf16.msra.mxu2 %v472_v57  ;;  %582 = vmatpush.bf16.xpose.msrb.mxu3 %v568_v58 }
 0x155   : > { %v470_v60 = vpop.permute.xlu1 %469 }
 0x156   : > { %497 = vmatpush.bf16.msrb.mxu0 %v470_v60  ;;  %1727 = vmatpush.bf16.msrb.mxu1 %v470_v60 }
 0x157   : > { %1728 = vmatpush.bf16.msra.mxu2 %v470_v60  ;;  %583 = vmatpush.bf16.xpose.msrb.mxu3 %v565_v61 }
 0x15d   : > { %v468_v63 = vpop.permute.xlu1 %467 }
 0x15e   : > { %498 = vmatpush.bf16.msrb.mxu0 %v468_v63  ;;  %1729 = vmatpush.bf16.msrb.mxu1 %v468_v63 }
 0x15f   : > { %1008 = vmatpush.bf16.xpose.msra.mxu3 %v1002_v62  ;;  %1730 = vmatpush.bf16.msra.mxu2 %v468_v63 }
 0x160   : > { %1665 = vmatmul.msk.bf16.vlgmr.msrb.gmra.mxu3 %vm336_vm1, %v537_v40 }
 0x165   : > { %v541_v1 = vpop.permute.xlu1 %540 }
 0x167   : > { %1009 = vmatpush.bf16.xpose.msra.mxu3 %v999_v0 }
 0x16d   : > { %v765_v3 = vpop.permute.xlu1 %764 }
 0x16e   : > { %v788_v4 = vsel %vm336_vm1, %v765_v3, 0 }
 0x16f   : > { %1010 = vmatpush.bf16.xpose.msra.mxu3 %v996_v2  ;;  %794 = vmatpush.bf16.xpose.msrb.mxu2 %v788_v4 }
 0x170   : > { %1666 = vmatmul.msk.bf16.gmra.mxu3 %vm336_vm1, %v539_v55 }
 0x177   : > { %1011 = vmatpush.bf16.xpose.msra.mxu3 %v993_v5  ;;  %795 = vmatpush.bf16.xpose.msrb.mxu2 %v785_v6 }
 0x17f   : > { %796 = vmatpush.bf16.xpose.msrb.mxu2 %v782_v7 }
 0x180   : > { %1667 = vmatmul.msk.bf16.gmra.mxu3 %vm336_vm1, %v541_v1 }
 0x187   : > { %797 = vmatpush.bf16.xpose.msrb.mxu2 %v779_v8 }
 0x18d   : > { %v2149_v9 = vpop.f32.mrf.mxu1 }
 0x18e   : > { %v391_v27 = vsel %vm390_vm2, %v2149_v9, -inf }
 0x190   : > { %1668 = vmatmul.msk.bf16.gmra.mxu3 %vm336_vm1, %v543_v10 }
 0x195   : > { %v2152_v11 = vpop.f32.mrf.mxu1 }
 0x196   : > { %v394_v25 = vsel %vm390_vm2, %v2152_v11, -inf }
 0x19d   : > { %v2154_v12 = vpop.f32.mrf.mxu1 }
 0x19e   : > { %v397_v52 = vsel %vm390_vm2, %v2154_v12, -inf }
 0x1a5   : > { %v2156_v13 = vpop.f32.mrf.mxu1 }
 0x1a6   : > { %v400_v49 = vsel %vm390_vm2, %v2156_v13, -inf }
 0x1ad   : > { %v380_v15 = vpop.f32.mrf.mxu1 }
 0x1ae   : > { %v403_v16 = vsel %vm390_vm2, %v380_v15, -inf }
 0x1af   : > { %404 = vmax.xlane.f32.xlu2 %v403_v16 }
 0x1b5   : > { %v382_v17 = vpop.f32.mrf.mxu1 }
 0x1b6   : > { %v406_v18 = vsel %vm390_vm2, %v382_v17, -inf }
 0x1b7   : > { %407 = vmax.xlane.f32.xlu0 %v406_v18 }
 0x1bd   : > { %v2160_v20 = vpop.f32.mrf.mxu1 }
 0x1be   : > { %v409_v21 = vsel %vm390_vm2, %v2160_v20, -inf }
 0x1bf   : > { %410 = vmax.xlane.f32.xlu1 %v409_v21 }
 0x1c5   : > { %v2188_v29 = vpop.f32.mrf.mxu1 }
 0x1c6   : > { %v412_v30 = vsel %vm390_vm2, %v2188_v29, -inf }
 0x1c7   : > { %752 = vrot.lane.b32.xlu2 %v2065_v19, %s1988_s27 }
 0x1cb   : > { %964 = vrot.lane.b32.xlu0 %v2059_v14, %s1989_s28 }
 0x1cf   : > { %754 = vrot.lane.b32.xlu2 %v2076_v26, %s1988_s27 }
 0x1d3   : > { %966 = vrot.lane.b32.xlu0 %v2065_v19, %s1989_s28 }
 0x1d7   : > { %756 = vrot.lane.b32.xlu2 %v2093_v33, %s1988_s27 }
 0x1d8   : > { %750 = vrot.lane.b32.xlu1 %v2059_v14, %s1988_s27 }
 0x1db   : > { %968 = vrot.lane.b32.xlu0 %v2076_v26, %s1989_s28 }
 0x1e0   : > { %970 = vrot.lane.b32.xlu1 %v2093_v33, %s1989_s28 }
 0x1e3   : > { %v2172_v22 = vpop.f32.mrf.mxu3 }
 0x1e4   : > { %v605_v34 = vsel %vm390_vm2, %v2172_v22, -inf }
 0x1e8   : > { %687 = vrot.lane.b32.xlu1 %v2093_v33, %s1990_s29 }
 0x1eb   : > { %v2176_v23 = vpop.f32.mrf.mxu3 }
 0x1f0   : > { %681 = vrot.lane.b32.xlu1 %v2059_v14, %s1990_s29 }
 0x1f3   : > { %v2180_v24 = vpop.f32.mrf.mxu3 }
 0x1f8   : > { %1113 = vrot.lane.b32.xlu1 %v2076_v26, %s1991_s30 }
 0x1fb   : > { %v2186_v28 = vpop.f32.mrf.mxu3 }
 0x1fc   : > { %v614_v18 = vsel %vm390_vm2, %v2186_v28, -inf }
 0x200   : > { %395 = vmax.xlane.f32.xlu2 %v394_v25 }
 0x203   : > { %v2192_v31 = vpop.f32.mrf.mxu3 }
 0x204   : > { %v617_v38 = vsel %vm390_vm2, %v2192_v31, -inf }
 0x205   : > { %392 = vmax.xlane.f32.xlu0 %v391_v27 }
 0x20b   : > { %v2195_v32 = vpop.f32.mrf.mxu3 }
 0x20d   : > { %413 = vmax.xlane.f32.xlu0 %v412_v30 }
 0x213   : > { %v2200_v36 = vpop.f32.mrf.mxu3 }
 0x218   : > { %685 = vrot.lane.b32.xlu2 %v2076_v26, %s1990_s29 }
 0x21b   : > { %v2204_v43 = vpop.f32.mrf.mxu3 }
 0x21c   : > { %v626_v44 = vsel %vm390_vm2, %v2204_v43, -inf }
 0x221   : > { %683 = vrot.lane.b32.xlu0 %v2065_v19, %s1990_s29 }
 0x222   : > { %606 = vmax.xlane.f32.xlu1 %v605_v34  ;;  %v405_v35 = vpop.xlane.xlu2 %404 }
 0x223   : > { %v419_v37 = vsub.f32 %v380_v15, %v405_v35  ;;  %v611_v15 = vsel %vm390_vm2, %v2180_v24, -inf }
 0x225   : > { %v431_v39 = vmul.f32 1.442695, %v419_v37 }
 0x227   : > { %1814 = vpow2.f32 %v431_v39 }
 0x22a   : > { %v408_v40 = vpop.xlane.xlu0 %407  ;;  %618 = vmax.xlane.f32.xlu1 %v617_v38  ;;  %v753_v55 = vpop.permute.xlu2 %752 }
 0x22b   : > { %v420_v41 = vsub.f32 %v382_v17, %v408_v40 }
 0x22d   : > { %v433_v42 = vmul.f32 1.442695, %v420_v41  ;;  %v2208_v45 = vpop.eup %1814 }
 0x22f   : > { %1816 = vpow2.f32 %v433_v42 }
 0x232   : > { %627 = vmax.xlane.f32.xlu1 %v626_v44  ;;  %v411_v50 = vpop.xlane.xlu1 %410  ;;  %v755_v58 = vpop.permute.xlu2 %754 }
 0x235   : > { %v2210_v46 = vpop.eup %1816 }
 0x236   : > { %v465_v47 = vpack.c.bf16 %v2210_v46, %v2208_v45 }
 0x238   : > { %1663 = vmatmul.msk.bf16.vlgmr.msra.gmra.mxu2 %vm390_vm2, %v465_v47  ;;  %v623_v47 = vsel %vm390_vm2, %v2200_v36, -inf }
 0x23a   : > { %v2232_v59 = vpop.permute.xlu2 %756 }
 0x23d   : > { %v965_v48 = vpop.permute.xlu0 %964 }
 0x23e   : > { %1681 = vmatmul.msk.bf16.vlgmr.msra.gmra.mxu3 %vm336_vm1, %v965_v48 }
 0x241   : > { %401 = vmax.xlane.f32.xlu2 %v400_v49 }
 0x245   : > { %v967_v53 = vpop.permute.xlu0 %966 }
 0x24a   : > { %v751_v51 = vpop.permute.xlu1 %750 }
 0x24b   : > { %398 = vmax.xlane.f32.xlu0 %v397_v52 }
 0x24d   : > { %v969_v57 = vpop.permute.xlu0 %968 }
 0x24e   : > { %1682 = vmatmul.msk.bf16.gmra.mxu3 %vm336_vm1, %v967_v53 }
 0x252   : > { %v971_v54 = vpop.permute.xlu1 %970 }
 0x259   : > { %901 = vrot.lane.b32.xlu2 %v2093_v33, %s1992_s6 }
 0x25a   : > { %v688_v56 = vpop.permute.xlu1 %687 }
 0x25b   : > { %709 = vmatpush.bf16.msra.mxu0 %v688_v56 }
 0x25e   : > { %1683 = vmatmul.msk.bf16.gmra.mxu3 %vm336_vm1, %v969_v57 }
 0x25f   : > { %1115 = vrot.lane.b32.xlu0 %v2093_v33, %s1991_s30 }
 0x261   : > { %899 = vrot.lane.b32.xlu2 %v2076_v26, %s1992_s6  ;;  %v421_v26 = vsub.f32 %v2160_v20, %v411_v50  ;;  %v620_v20 = vsel %vm390_vm2, %v2195_v32, -inf }
 0x262   : > { %v682_v17 = vpop.permute.xlu1 %681 }
 0x263   : > { %v435_v2 = vmul.f32 1.442695, %v421_v26 }
 0x267   : > { %897 = vrot.lane.b32.xlu0 %v2065_v19, %s1992_s6 }
 0x269   : > { %1111 = vrot.lane.b32.xlu2 %v2065_v19, %s1991_s30 }
 0x26a   : > { %v1114_v44 = vpop.permute.xlu1 %1113 }
 0x26e   : > { %1684 = vmatmul.msk.bf16.gmra.mxu3 %vm336_vm1, %v971_v54 }
 0x273   : > { %v396_v60 = vpop.xlane.xlu2 %395 }
 0x274   : > { %v416_v61 = vsub.f32 %v2152_v11, %v396_v60  ;;  %v608_v11 = vsel %vm390_vm2, %v2176_v23, -inf }
 0x276   : > { %v425_v62 = vmul.f32 1.442695, %v416_v61 }
 0x278   : > { %v393_v63 = vpop.xlane.xlu0 %392  ;;  %1818 = vpow2.f32 %v425_v62 }
 0x279   : > { %v415_v33 = vsub.f32 %v2149_v9, %v393_v63 }
 0x27b   : > { %v423_v0 = vmul.f32 1.442695, %v415_v33  ;;  %v686_v1 = vpop.permute.xlu2 %685 }
 0x27c   : > { %710 = vmatpush.bf16.msra.mxu0 %v686_v1 }
 0x27d   : > { %1820 = vpow2.f32 %v423_v0 }
 0x27e   : > { %v2239_v4 = vpop.eup %1818  ;;  %1822 = vpow2.f32 %v435_v2 }
 0x280   : > { %v414_v19 = vpop.xlane.xlu0 %413 }
 0x281   : > { %v422_v3 = vsub.f32 %v2188_v29, %v414_v19 }
 0x283   : > { %v2241_v5 = vpop.eup %1820  ;;  %v437_v6 = vmul.f32 1.442695, %v422_v3 }
 0x284   : > { %v463_v7 = vpack.c.bf16 %v2239_v4, %v2241_v5  ;;  %v2246_v8 = vpop.eup %1822 }
 0x285   : > { %1824 = vpow2.f32 %v437_v6 }
 0x286   : > { %1661 = vmatmul.msk.bf16.vlgmr.msrb.gmra.mxu0 %vm390_vm2, %v463_v7 }
 0x28b   : > { %v2248_v9 = vpop.eup %1824 }
 0x28c   : > { %v466_v10 = vpack.c.bf16 %v2248_v9, %v2246_v8 }
 0x28e   : > { %1664 = vmatmul.msk.bf16.gmra.mxu2 %vm390_vm2, %v466_v10 }
 0x291   : > { %609 = vmax.xlane.f32.xlu0 %v608_v11 }
 0x292   : > { %612 = vmax.xlane.f32.xlu2 %v611_v15 }
 0x293   : > { %v684_v16 = vpop.permute.xlu0 %683 }
 0x294   : > { %711 = vmatpush.bf16.msra.mxu0 %v684_v16 }
 0x295   : > { %v607_v50 = vpop.xlane.xlu1 %606 }
 0x296   : > { %v629_v52 = vsub.f32 %v2172_v22, %v607_v50 }
 0x298   : > { %712 = vmatpush.bf16.msra.mxu0 %v682_v17  ;;  %v637_v53 = vmul.f32 1.442695, %v629_v52 }
 0x299   : > { %615 = vmax.xlane.f32.xlu0 %v614_v18 }
 0x29a   : > { %621 = vmax.xlane.f32.xlu2 %v620_v20 }
 0x29d   : > { %v619_v7 = vpop.xlane.xlu1 %618 }
 0x29e   : > { %1673 = vmatmul.msk.bf16.vlgmr.msrb.gmra.mxu2 %vm336_vm1, %v751_v51  ;;  %v633_v16 = vsub.f32 %v2192_v31, %v619_v7 }
 0x2ad   : > { %895 = vrot.lane.b32.xlu0 %v2059_v14, %s1992_s6 }
 0x2ae   : > { %1674 = vmatmul.msk.bf16.gmra.mxu2 %vm336_vm1, %v753_v55 }
 0x2b2   : > { %1109 = vrot.lane.b32.xlu2 %v2059_v14, %s1991_s30 }
 0x2b4   : > { %v402_v21 = vpop.xlane.xlu2 %401 }
 0x2b5   : > { %v418_v25 = vsub.f32 %v2156_v13, %v402_v21 }
 0x2b7   : > { %v429_v29 = vmul.f32 1.442695, %v418_v25  ;;  %v645_v25 = vmul.f32 1.442695, %v633_v16 }
 0x2b9   : > { %1826 = vpow2.f32 %v429_v29 }
 0x2bb   : > { %v2289_v51 = vpop.f32.mrf.mxu2 }
 0x2bc   : > { %v902_v27 = vpop.permute.xlu2 %901 }
 0x2bd   : > { %923 = vmatpush.bf16.msra.mxu1 %v902_v27 }
 0x2be   : > { %1675 = vmatmul.msk.bf16.gmra.mxu2 %vm336_vm1, %v755_v58  ;;  %v399_v30 = vpop.xlane.xlu0 %398 }
 0x2bf   : > { %v417_v34 = vsub.f32 %v2154_v12, %v399_v30  ;;  %v2274_v13 = vpop.eup %1826  ;;  %v628_v30 = vpop.xlane.xlu1 %627 }
 0x2c1   : > { %v427_v35 = vmul.f32 1.442695, %v417_v34  ;;  %v2270_v37 = vpop.f32.mrf.mxu3 }
 0x2c2   : > { %v1033_v38 = vsel %vm390_vm2, %v2270_v37, -inf }
 0x2c3   : > { %1828 = vpow2.f32 %v427_v35  ;;  %1034 = vmax.xlane.f32.xlu1 %v1033_v38 }
 0x2c4   : > { %v900_v14 = vpop.permute.xlu2 %899  ;;  %1830 = vpow2.f32 %v637_v53 }
 0x2c5   : > { %924 = vmatpush.bf16.msra.mxu1 %v900_v14 }
 0x2c9   : > { %v2276_v39 = vpop.eup %1828  ;;  %v2278_v40 = vpop.f32.mrf.mxu3 }
 0x2ca   : > { %v1036_v12 = vsel %vm390_vm2, %v2278_v40, -inf  ;;  %v464_v41 = vpack.c.bf16 %v2274_v13, %v2276_v39  ;;  %v2297_v62 = vpop.eup %1830 }
 0x2cb   : > { %1037 = vmax.xlane.f32.xlu1 %v1036_v12 }
 0x2cc   : > { %1662 = vmatmul.msk.bf16.vlgmr.msrb.gmra.mxu1 %vm390_vm2, %v464_v41  ;;  %v1112_v48 = vpop.permute.xlu2 %1111 }
 0x2ce   : > { %1676 = vmatmul.msk.bf16.gmra.mxu2 %vm336_vm1, %v2232_v59  ;;  %v2295_v59 = vpop.f32.mrf.mxu2 }
 0x2d1   : > { %v1116_v42 = vpop.permute.xlu0 %1115  ;;  %v2292_v55 = vpop.f32.mrf.mxu3 }
 0x2d2   : > { %1137 = vmatpush.bf16.msrb.mxu0 %v1116_v42  ;;  %v1039_v14 = vsel %vm390_vm2, %v2292_v55, -inf }
 0x2d6   : > { %1138 = vmatpush.bf16.msrb.mxu0 %v1114_v44 }
 0x2d7   : > { %624 = vmax.xlane.f32.xlu0 %v623_v47 }
 0x2d9   : > { %v898_v49 = vpop.permute.xlu0 %897  ;;  %v2301_v33 = vpop.f32.mrf.mxu3 }
 0x2da   : > { %925 = vmatpush.bf16.msra.mxu1 %v898_v49  ;;  %1139 = vmatpush.bf16.msrb.mxu0 %v1112_v48  ;;  %v1042_v48 = vsel %vm390_vm2, %v2301_v33, -inf }
 0x2e1   : > { %v2310_v3 = vpop.f32.mrf.mxu3 }
 0x2e9   : > { %v2327_v20 = vpop.f32.mrf.mxu3 }
 0x2f1   : > { %v2335_v29 = vpop.f32.mrf.mxu3 }
 0x2f9   : > { %v2345_v42 = vpop.f32.mrf.mxu3 }
 0x2fa   : > { %v1054_v47 = vsel %vm390_vm2, %v2345_v42, -inf }
 0x304   : > { %v610_v54 = vpop.xlane.xlu0 %609 }
 0x305   : > { %v630_v56 = vsub.f32 %v2176_v23, %v610_v54  ;;  %v613_v57 = vpop.xlane.xlu2 %612 }
 0x306   : > { %v631_v23 = vsub.f32 %v2180_v24, %v613_v57 }
 0x307   : > { %v639_v58 = vmul.f32 1.442695, %v630_v56  ;;  %v1045_v56 = vsel %vm390_vm2, %v2310_v3, -inf }
 0x308   : > { %v641_v2 = vmul.f32 1.442695, %v631_v23 }
 0x309   : > { %1832 = vpow2.f32 %v639_v58  ;;  %v636_v58 = vsub.f32 %v2204_v43, %v628_v30 }
 0x30c   : > { %v616_v60 = vpop.xlane.xlu0 %615 }
 0x30d   : > { %v622_v61 = vpop.xlane.xlu2 %621  ;;  %v632_v22 = vsub.f32 %v2186_v28, %v616_v60 }
 0x30e   : > { %v634_v24 = vsub.f32 %v2195_v32, %v622_v61  ;;  %v651_v61 = vmul.f32 1.442695, %v636_v58 }
 0x30f   : > { %v2299_v63 = vpop.eup %1832  ;;  %v643_v26 = vmul.f32 1.442695, %v632_v22 }
 0x310   : > { %v677_v0 = vpack.c.bf16 %v2299_v63, %v2297_v62  ;;  %v647_v21 = vmul.f32 1.442695, %v634_v24 }
 0x311   : > { %v2307_v1 = vpop.f32.mrf.mxu2  ;;  %1834 = vpow2.f32 %v643_v26 }
 0x312   : > { %1669 = vmatmul.msk.bf16.vlgmr.msra.gmra.mxu0 %vm390_vm2, %v677_v0  ;;  %1836 = vpow2.f32 %v641_v2  ;;  %v1048_v2 = vsel %vm390_vm2, %v2327_v20, -inf }
 0x313   : > { %1838 = vpow2.f32 %v647_v21 }
 0x314   : > { %1840 = vpow2.f32 %v645_v25 }
 0x315   : > { %v1110_v19 = vpop.permute.xlu2 %1109 }
 0x316   : > { %1140 = vmatpush.bf16.msrb.mxu0 %v1110_v19 }
 0x317   : > { %v2314_v28 = vpop.eup %1834 }
 0x318   : > { %v2316_v10 = vpop.eup %1836 }
 0x319   : > { %v2312_v6 = vpop.f32.mrf.mxu2  ;;  %v678_v15 = vpack.c.bf16 %v2314_v28, %v2316_v10  ;;  %v2333_v31 = vpop.eup %1838  ;;  %v659_v7 = vsel %vm390_vm2, %v2316_v10, 0.0  ;;  %v656_v10 = vsel %vm390_vm2, %v2299_v63, 0.0  ;;  %v662_v63 = vsel %vm390_vm2, %v2314_v28, 0.0 }
 0x31a   : > { %v1841_v34 = vpop.eup %1840 }
 0x31b   : > { %v679_v35 = vpack.c.bf16 %v2333_v31, %v1841_v34 }
 0x31f   : > { %v896_v11 = vpop.permute.xlu0 %895 }
 0x320   : > { %926 = vmatpush.bf16.msra.mxu1 %v896_v11 }
 0x321   : > { %v2322_v17 = vpop.f32.mrf.mxu2 }
 0x322   : > { %1670 = vmatmul.msk.bf16.gmra.mxu0 %vm390_vm2, %v678_v15  ;;  %v819_v18 = vsel %vm390_vm2, %v2322_v17, -inf }
 0x323   : > { %820 = vmax.xlane.f32.xlu0 %v819_v18 }
 0x329   : > { %v2329_v32 = vpop.f32.mrf.mxu2 }
 0x32a   : > { %v822_v27 = vsel %vm390_vm2, %v2329_v32, -inf }
 0x32b   : > { %823 = vmax.xlane.f32.xlu1 %v822_v27 }
 0x331   : > { %v2338_v38 = vpop.f32.mrf.mxu2 }
 0x332   : > { %1671 = vmatmul.msk.bf16.gmra.mxu0 %vm390_vm2, %v679_v35  ;;  %v825_v12 = vsel %vm390_vm2, %v2338_v38, -inf }
 0x333   : > { %1040 = vmax.xlane.f32.xlu1 %v1039_v14  ;;  %826 = vmax.xlane.f32.xlu0 %v825_v12  ;;  %v2396_v12 = vpop.f32.mrf.mxu0 }
 0x336   : > { %v1035_v41 = vpop.xlane.xlu1 %1034 }
 0x337   : > { %v1057_v43 = vsub.f32 %v2270_v37, %v1035_v41  ;;  %v665_v37 = vsel %vm390_vm2, %v1841_v34, 0.0  ;;  %v439_v34 = vsel %vm390_vm2, %v2241_v5, 0.0 }
 0x339   : > { %v2347_v44 = vpop.f32.mrf.mxu2  ;;  %v1065_v15 = vmul.f32 1.442695, %v1057_v43 }
 0x33a   : > { %v828_v49 = vsel %vm390_vm2, %v2347_v44, -inf }
 0x33b   : > { %1055 = vmax.xlane.f32.xlu1 %v1054_v47  ;;  %1043 = vmax.xlane.f32.xlu0 %v1042_v48  ;;  %v2400_v5 = vpop.f32.mrf.mxu0 }
 0x33c   : > { %829 = vmax.xlane.f32.xlu2 %v828_v49 }
 0x33e   : > { %v1038_v50 = vpop.xlane.xlu1 %1037 }
 0x33f   : > { %v1058_v52 = vsub.f32 %v2278_v40, %v1038_v50  ;;  %v653_v40 = vsel %vm390_vm2, %v2297_v62, 0.0  ;;  %v1051_v62 = vsel %vm390_vm2, %v2335_v29, -inf }
 0x341   : > { %v1067_v53 = vmul.f32 1.442695, %v1058_v52  ;;  %v2356_v54 = vpop.f32.mrf.mxu2 }
 0x342   : > { %v831_v57 = vsel %vm390_vm2, %v2356_v54, -inf }
 0x343   : > { %1842 = vpow2.f32 %v1067_v53  ;;  %1046 = vmax.xlane.f32.xlu0 %v1045_v56 }
 0x344   : > { %832 = vmax.xlane.f32.xlu2 %v831_v57  ;;  %1844 = vpow2.f32 %v651_v61 }
 0x349   : > { %v1843_v60 = vpop.eup %1842  ;;  %v2366_v23 = vpop.f32.mrf.mxu2 }
 0x34a   : > { %v625_v22 = vpop.xlane.xlu0 %624  ;;  %v1084_v0 = vsel %vm390_vm2, %v1843_v60, 0.0  ;;  %v1845_v24 = vpop.eup %1844 }
 0x34b   : > { %v635_v26 = vsub.f32 %v2200_v36, %v625_v22  ;;  %1085 = vadd.xlane.f32.xlu1 %v1084_v0  ;;  %654 = vadd.xlane.f32.xlu0 %v653_v40  ;;  %v674_v35 = vsel %vm390_vm2, %v1845_v24, 0.0 }
 0x34c   : > { %1049 = vmax.xlane.f32.xlu2 %v1048_v2 }
 0x34d   : > { %v649_v19 = vmul.f32 1.442695, %v635_v26 }
 0x34f   : > { %1846 = vpow2.f32 %v649_v19 }
 0x350   : > { %1848 = vpow2.f32 %v1065_v15 }
 0x351   : > { %v2378_v11 = vpop.f32.mrf.mxu2 }
 0x353   : > { %660 = vadd.xlane.f32.xlu0 %v659_v7 }
 0x354   : > { %1052 = vmax.xlane.f32.xlu2 %v1051_v62 }
 0x355   : > { %v2376_v36 = vpop.eup %1846 }
 0x356   : > { %v680_v16 = vpack.c.bf16 %v1845_v24, %v2376_v36  ;;  %v1849_v21 = vpop.eup %1848 }
 0x357   : > { %v1081_v27 = vsel %vm390_vm2, %v1849_v21, 0.0  ;;  %v1105_v30 = vpack.c.bf16 %v1843_v60, %v1849_v21 }
 0x358   : > { %1672 = vmatmul.msk.bf16.gmra.mxu0 %vm390_vm2, %v680_v16 }
 0x359   : > { %v2385_v18 = vpop.f32.mrf.mxu2 }
 0x35a   : > { %v840_v25 = vsel %vm390_vm2, %v2385_v18, -inf }
 0x35b   : > { %666 = vadd.xlane.f32.xlu0 %v665_v37 }
 0x35c   : > { %657 = vadd.xlane.f32.xlu2 %v656_v10 }
 0x363   : > { %841 = vmax.xlane.f32.xlu0 %v840_v25 }
 0x364   : > { %1082 = vadd.xlane.f32.xlu2 %v1081_v27 }
 0x368   : > { %1685 = vmatmul.msk.bf16.vlgmr.msrb.gmra.mxu0 %vm390_vm2, %v1105_v30 }
 0x36b   : > { %440 = vadd.xlane.f32.xlu0 %v439_v34 }
 0x36c   : > { %663 = vadd.xlane.f32.xlu2 %v662_v63 }
 0x373   : > { %675 = vadd.xlane.f32.xlu0 %v674_v35 }
 0x38f   : > { %v2410_v60 = vpop.f32.mrf.mxu0 }
 0x396   : > { %v821_v14 = vpop.xlane.xlu0 %820 }
 0x397   : > { %v843_v41 = vsub.f32 %v2322_v17, %v821_v14 }
 0x399   : > { %v851_v47 = vmul.f32 1.442695, %v843_v41 }
 0x39b   : > { %1850 = vpow2.f32 %v851_v47 }
 0x39e   : > { %v824_v48 = vpop.xlane.xlu1 %823 }
 0x39f   : > { %v844_v49 = vsub.f32 %v2329_v32, %v824_v48 }
 0x3a1   : > { %v853_v50 = vmul.f32 1.442695, %v844_v49  ;;  %v2403_v56 = vpop.eup %1850 }
 0x3a3   : > { %1852 = vpow2.f32 %v853_v50  ;;  %v442_v50 = vsel %vm390_vm2, %v2239_v4, 0.0 }
 0x3a6   : > { %v1041_v52 = vpop.xlane.xlu1 %1040  ;;  %v827_v28 = vpop.xlane.xlu0 %826 }
 0x3a7   : > { %v1059_v53 = vsub.f32 %v2292_v55, %v1041_v52  ;;  %v845_v32 = vsub.f32 %v2338_v38, %v827_v28  ;;  %v716_v38 = vpop.f32.mrf.mxu0 }
 0x3a9   : > { %v2405_v57 = vpop.eup %1852  ;;  %v1069_v58 = vmul.f32 1.442695, %v1059_v53  ;;  %v855_v22 = vmul.f32 1.442695, %v845_v32  ;;  %v834_v32 = vsel %vm390_vm2, %v2366_v23, -inf }
 0x3aa   : > { %v891_v17 = vpack.c.bf16 %v2405_v57, %v2403_v56 }
 0x3ab   : > { %1854 = vpow2.f32 %v1069_v58 }
 0x3ac   : > { %1677 = vmatmul.msk.bf16.vlgmr.msra.gmra.mxu1 %vm390_vm2, %v891_v17  ;;  %1856 = vpow2.f32 %v855_v22 }
 0x3ae   : > { %v1044_v61 = vpop.xlane.xlu0 %1043  ;;  %v1056_v48 = vpop.xlane.xlu1 %1055 }
 0x3af   : > { %v830_v0 = vpop.xlane.xlu2 %829  ;;  %v1060_v55 = vsub.f32 %v2301_v33, %v1044_v61  ;;  %v2430_v27 = vpop.f32.mrf.mxu0  ;;  %v1064_v53 = vsub.f32 %v2345_v42, %v1056_v48 }
 0x3b0   : > { %v846_v40 = vsub.f32 %v2347_v44, %v830_v0  ;;  %v668_v44 = vsel %vm390_vm2, %v2333_v31, 0.0 }
 0x3b1   : > { %v1855_v26 = vpop.eup %1854  ;;  %v1071_v2 = vmul.f32 1.442695, %v1060_v55  ;;  %v1079_v58 = vmul.f32 1.442695, %v1064_v53 }
 0x3b2   : > { %v857_v19 = vmul.f32 1.442695, %v846_v40  ;;  %v1087_v43 = vsel %vm390_vm2, %v1855_v26, 0.0  ;;  %v2419_v15 = vpop.eup %1856 }
 0x3b3   : > { %1088 = vadd.xlane.f32.xlu2 %v1087_v43 }
 0x3b4   : > { %1858 = vpow2.f32 %v857_v19  ;;  %v448_v19 = vsel %vm390_vm2, %v2274_v13, 0.0 }
 0x3b5   : > { %1860 = vpow2.f32 %v1071_v2  ;;  %v837_v2 = vsel %vm390_vm2, %v2378_v11, -inf }
 0x3b6   : > { %v1047_v7 = vpop.xlane.xlu0 %1046 }
 0x3b7   : > { %v2416_v62 = vpop.xlane.xlu2 %832  ;;  %v1061_v24 = vsub.f32 %v2310_v3, %v1047_v7  ;;  %v721_v47 = vpop.f32.mrf.mxu0 }
 0x3b9   : > { %v1073_v33 = vmul.f32 1.442695, %v1061_v24 }
 0x3ba   : > { %v2421_v16 = vpop.eup %1858 }
 0x3bb   : > { %v1861_v37 = vpop.eup %1860  ;;  %1862 = vpow2.f32 %v1073_v33  ;;  %669 = vadd.xlane.f32.xlu2 %v668_v44  ;;  %v892_v10 = vpack.c.bf16 %v2421_v16, %v2419_v15 }
 0x3bc   : > { %v1090_v21 = vsel %vm390_vm2, %v1861_v37, 0.0  ;;  %v1106_v25 = vpack.c.bf16 %v1861_v37, %v1855_v26 }
 0x3bd   : > { %1091 = vadd.xlane.f32.xlu1 %v1090_v21  ;;  %1678 = vmatmul.msk.bf16.gmra.mxu1 %vm390_vm2, %v892_v10 }
 0x3be   : > { %1686 = vmatmul.msk.bf16.gmra.mxu0 %vm390_vm2, %v1106_v25  ;;  %v655_v52 = vpop.xlane.xlu0 %654  ;;  %v1086_v25 = vpop.xlane.xlu1 %1085 }
 0x3bf   : > { %v1050_v3 = vpop.xlane.xlu2 %1049  ;;  %v2443_v22 = vpop.f32.mrf.mxu0 }
 0x3c0   : > { %v1062_v30 = vsub.f32 %v2327_v20, %v1050_v3 }
 0x3c1   : > { %v1863_v31 = vpop.eup %1862 }
 0x3c2   : > { %v1075_v34 = vmul.f32 1.442695, %v1062_v30  ;;  %v1093_v63 = vsel %vm390_vm2, %v1863_v31, 0.0 }
 0x3c3   : > { %1094 = vadd.xlane.f32.xlu2 %v1093_v63  ;;  %v445_v63 = vsel %vm390_vm2, %v2276_v39, 0.0  ;;  %v876_v39 = vsel %vm390_vm2, %v2421_v16, 0.0 }
 0x3c4   : > { %1864 = vpow2.f32 %v1075_v34 }
 0x3c6   : > { %v661_v37 = vpop.xlane.xlu0 %660 }
 0x3c7   : > { %v1053_v35 = vpop.xlane.xlu2 %1052  ;;  %v2451_v7 = vpop.f32.mrf.mxu0 }
 0x3c8   : > { %v1063_v14 = vsub.f32 %v2335_v29, %v1053_v35 }
 0x3ca   : > { %v1865_v41 = vpop.eup %1864  ;;  %v1077_v49 = vmul.f32 1.442695, %v1063_v14 }
 0x3cb   : > { %v1096_v28 = vsel %vm390_vm2, %v1865_v41, 0.0  ;;  %443 = vadd.xlane.f32.xlu2 %v442_v50  ;;  %v1107_v20 = vpack.c.bf16 %v1865_v41, %v1863_v31 }
 0x3cc   : > { %1866 = vpow2.f32 %v1077_v49  ;;  %1097 = vadd.xlane.f32.xlu1 %v1096_v28 }
 0x3cd   : > { %1868 = vrcp.f32 %v655_v52 }
 0x3ce   : > { %1687 = vmatmul.msk.bf16.gmra.mxu0 %vm390_vm2, %v1107_v20  ;;  %v667_v50 = vpop.xlane.xlu0 %666 }
 0x3cf   : > { %v658_v29 = vpop.xlane.xlu2 %657 }
 0x3d0   : > { %1870 = vrcp.f32 %v658_v29 }
 0x3d1   : > { %1872 = vpow2.f32 %v1079_v58 }
 0x3d2   : > { %v1867_v17 = vpop.eup %1866 }
 0x3d3   : > { %v1099_v4 = vsel %vm390_vm2, %v1867_v17, 0.0  ;;  %v1869_v61 = vpop.eup %1868 }
 0x3d4   : > { %835 = vmax.xlane.f32.xlu1 %v834_v32  ;;  %1100 = vadd.xlane.f32.xlu2 %v1099_v4  ;;  %v742_v42 = vmul.f32 %v1869_v61, %v2410_v60  ;;  %v671_v60 = vsel %vm390_vm2, %v2376_v36, 0.0  ;;  %v847_v32 = vsub.f32 %v2356_v54, %v2416_v62 }
 0x3d6   : > { %v1871_v0 = vpop.eup %1870  ;;  %v842_v52 = vpop.xlane.xlu0 %841 }
 0x3d7   : > { %v743_v55 = vmul.f32 %v1871_v0, %v716_v38  ;;  %v1873_v26 = vpop.eup %1872  ;;  %v2456_v38 = vpop.f32.mrf.mxu0 }
 0x3d8   : > { %v1108_v43 = vpack.c.bf16 %v1873_v26, %v1867_v17  ;;  %v1083_v24 = vpop.xlane.xlu2 %1082  ;;  %v1102_v33 = vsel %vm390_vm2, %v1873_v26, 0.0 }
 0x3d9   : > { %v1753_v40 = vpack.i.bf16 %v743_v55, %v742_v42  ;;  %v859_v55 = vmul.f32 1.442695, %v847_v32 }
 0x3db   : > { %1754 = vrot.lane.b32.xlu0 %v1753_v40, %s1993_s7 }
 0x3dc   : > { %838 = vmax.xlane.f32.xlu1 %v837_v2  ;;  %449 = vadd.xlane.f32.xlu2 %v448_v19 }
 0x3de   : > { %1688 = vmatmul.msk.bf16.gmra.mxu0 %vm390_vm2, %v1108_v43  ;;  %v441_v53 = vpop.xlane.xlu0 %440 }
 0x3df   : > { %v2459_v44 = vpop.f32.mrf.mxu0 }
 0x3e0   : > { %v664_v13 = vpop.xlane.xlu2 %663 }
 0x3e1   : > { %1874 = vrcp.f32 %v664_v13 }
 0x3e2   : > { %1876 = vrcp.f32 %v661_v37 }
 0x3e3   : > { %1878 = vrcp.f32 %v1086_v25 }
 0x3e4   : > { %672 = vadd.xlane.f32.xlu1 %v671_v60  ;;  %1880 = vrcp.f32 %v1083_v24 }
 0x3e6   : > { %v676_v16 = vpop.xlane.xlu0 %675 }
 0x3e7   : > { %v1142_v10 = vpop.f32.mrf.mxu0  ;;  %v1875_v21 = vpop.eup %1874 }
 0x3e8   : > { %v1877_v3 = vpop.eup %1876  ;;  %v745_v30 = vmul.f32 %v1875_v21, %v721_v47  ;;  %v451_v47 = vsel %vm390_vm2, %v2208_v45, 0.0 }
 0x3e9   : > { %v744_v36 = vmul.f32 %v1877_v3, %v2430_v27  ;;  %v1879_v35 = vpop.eup %1878  ;;  %v870_v27 = vsel %vm390_vm2, %v2405_v57, 0.0  ;;  %v850_v3 = vsub.f32 %v2385_v18, %v842_v52 }
 0x3ea   : > { %v1881_v41 = vpop.eup %1880 }
 0x3eb   : > { %v1758_v31 = vpack.i.bf16 %v745_v30, %v744_v36  ;;  %v1170_v48 = vmul.f32 %v1881_v41, %v1142_v10  ;;  %v865_v30 = vmul.f32 1.442695, %v850_v3 }
 0x3ec   : > { %1103 = vadd.xlane.f32.xlu1 %v1102_v33 }
 0x3ef   : > { %v1144_v34 = vpop.f32.mrf.mxu0 }
 0x3f0   : > { %v1171_v14 = vmul.f32 %v1879_v35, %v1144_v34 }
 0x3f2   : > { %v1763_v49 = vpack.i.bf16 %v1171_v14, %v1170_v48 }
 0x405   : > { %446 = vadd.xlane.f32.xlu0 %v445_v63  ;;  %1759 = vrot.lane.b32.xlu1 %v1758_v31, %s1993_s7 }
 0x40d   : > { %452 = vadd.xlane.f32.xlu0 %v451_v47  ;;  %1764 = vrot.lane.b32.xlu1 %v1763_v49, %s1994_s8 }
 0x415   : > { %871 = vadd.xlane.f32.xlu0 %v870_v27 }
 0x41d   : > { %877 = vadd.xlane.f32.xlu0 %v876_v39 }
 0x426   : > { %v1089_v20 = vpop.xlane.xlu2 %1088 }
 0x427   : > { %1882 = vrcp.f32 %v1089_v20 }
 0x42d   : > { %v1883_v58 = vpop.eup %1882 }
 0x42e   : > { %v670_v4 = vpop.xlane.xlu2 %669 }
 0x430   : > { %v1092_v28 = vpop.xlane.xlu1 %1091 }
 0x431   : > { %1884 = vrcp.f32 %v1092_v28 }
 0x432   : > { %1886 = vrcp.f32 %v441_v53 }
 0x433   : > { %1888 = vpow2.f32 %v859_v55 }
 0x436   : > { %v1095_v62 = vpop.xlane.xlu2 %1094 }
 0x437   : > { %v1885_v17 = vpop.eup %1884 }
 0x438   : > { %v1887_v19 = vpop.eup %1886 }
 0x439   : > { %v528_v54 = vmul.f32 %v1887_v19, %v2396_v12 }
 0x43b   : > { %v1147_v29 = vpop.f32.mrf.mxu0 }
 0x43c   : > { %v1172_v61 = vmul.f32 %v1883_v58, %v1147_v29 }
 0x43e   : > { %v2490_v36 = vpop.xlane.xlu2 %443 }
 0x43f   : > { %v1098_v45 = vpop.xlane.xlu1 %1097 }
 0x443   : > { %v1149_v57 = vpop.f32.mrf.mxu0 }
 0x444   : > { %v1173_v0 = vmul.f32 %v1885_v17, %v1149_v57  ;;  %v505_v17 = vpop.f32.mrf.mxu1 }
 0x446   : > { %v1768_v42 = vpack.i.bf16 %v1173_v0, %v1172_v61 }
 0x447   : > { %v836_v40 = vpop.xlane.xlu1 %835  ;;  %v2501_v27 = vpop.xlane.xlu2 %1100 }
 0x448   : > { %v848_v26 = vsub.f32 %v2366_v23, %v836_v40  ;;  %1769 = vrot.lane.b32.xlu1 %v1768_v42, %s1994_s8  ;;  %v2484_v23 = vpop.eup %1888  ;;  %v873_v42 = vsel %vm390_vm2, %v2419_v15, 0.0  ;;  %v460_v15 = vsel %vm390_vm2, %v2248_v9, 0.0 }
 0x44a   : > { %v861_v2 = vmul.f32 1.442695, %v848_v26 }
 0x44b   : > { %v1152_v63 = vpop.f32.mrf.mxu0 }
 0x44c   : > { %1890 = vpow2.f32 %v861_v2  ;;  %v507_v57 = vpop.f32.mrf.mxu1 }
 0x44d   : > { %v2476_v43 = vpop.permute.xlu0 %1754 }
 0x44e   : > { %v1756_v60 = vunpack.i.l.bf16 %v2476_v43 }
 0x44f   : > { %v839_v24 = vpop.xlane.xlu1 %838  ;;  %v450_v58 = vpop.xlane.xlu2 %449 }
 0x450   : > { %v2481_v33 = vsel %vm336_vm1, %v528_v54, %v1756_v60  ;;  %v849_v13 = vsub.f32 %v2378_v11, %v839_v24 }
 0x452   : > { %v1891_v37 = vpop.eup %1890  ;;  %v863_v10 = vmul.f32 1.442695, %v849_v13 }
 0x453   : > { %v882_v21 = vsel %vm390_vm2, %v1891_v37, 0.0  ;;  %v893_v25 = vpack.c.bf16 %v1891_v37, %v2484_v23  ;;  %v1154_v28 = vpop.f32.mrf.mxu0 }
 0x454   : > { %1892 = vpow2.f32 %v863_v10  ;;  %883 = vadd.xlane.f32.xlu0 %v882_v21 }
 0x455   : > { %1679 = vmatmul.msk.bf16.gmra.mxu1 %vm390_vm2, %v893_v25  ;;  %1894 = vrcp.f32 %v676_v16 }
 0x457   : > { %v673_v12 = vpop.xlane.xlu1 %672 }
 0x458   : > { %1896 = vrcp.f32 %v673_v12 }
 0x459   : > { %1898 = vrcp.f32 %v670_v4 }
 0x45a   : > { %v1893_v11 = vpop.eup %1892  ;;  %1900 = vrcp.f32 %v667_v50 }
 0x45b   : > { %v885_v31 = vsel %vm390_vm2, %v1893_v11, 0.0  ;;  %v1895_v34 = vpop.eup %1894  ;;  %1902 = vpow2.f32 %v865_v30 }
 0x45c   : > { %886 = vadd.xlane.f32.xlu2 %v885_v31  ;;  %v2497_v41 = vmul.f32 %v1895_v34, %v2459_v44  ;;  %1904 = vrcp.f32 %v1098_v45 }
 0x45d   : > { %1906 = vrcp.f32 %v1095_v62  ;;  %v928_v62 = vpop.f32.mrf.mxu1 }
 0x45e   : > { %v1897_v18 = vpop.eup %1896  ;;  %1908 = vrcp.f32 %v450_v58  ;;  %v454_v58 = vsel %vm390_vm2, %v2210_v46, 0.0 }
 0x45f   : > { %v1899_v35 = vpop.eup %1898  ;;  %v2494_v14 = vmul.f32 %v1897_v18, %v2456_v38 }
 0x460   : > { %v1901_v48 = vpop.eup %1900  ;;  %v747_v39 = vmul.f32 %v1899_v35, %v2451_v7  ;;  %v2507_v7 = vpop.xlane.xlu1 %1103 }
 0x461   : > { %v1798_v49 = vpack.i.bf16 %v2497_v41, %v2494_v14  ;;  %v1903_v47 = vpop.eup %1902  ;;  %v746_v52 = vmul.f32 %v1901_v48, %v2443_v22  ;;  %v867_v22 = vsel %vm390_vm2, %v2403_v56, 0.0  ;;  %v879_v56 = vsel %vm390_vm2, %v2484_v23, 0.0 }
 0x462   : > { %v894_v50 = vpack.c.bf16 %v1903_v47, %v1893_v11  ;;  %v1905_v44 = vpop.eup %1904  ;;  %v888_v54 = vsel %vm390_vm2, %v1903_v47, 0.0 }
 0x463   : > { %v1783_v38 = vpack.i.bf16 %v747_v39, %v746_v52  ;;  %v1175_v20 = vmul.f32 %v1905_v44, %v1154_v28  ;;  %v1907_v53 = vpop.eup %1906 }
 0x464   : > { %v1174_v29 = vmul.f32 %v1907_v53, %v1152_v63  ;;  %v1909_v45 = vpop.eup %1908 }
 0x465   : > { %1680 = vmatmul.msk.bf16.gmra.mxu1 %vm390_vm2, %v894_v50  ;;  %v531_v61 = vmul.f32 %v1909_v45, %v507_v57  ;;  %v930_v60 = vpop.f32.mrf.mxu1  ;;  %v1157_v45 = vpop.f32.mrf.mxu0 }
 0x466   : > { %v1788_v32 = vpack.i.bf16 %v1175_v20, %v1174_v29 }
 0x468   : > { %1784 = vrot.lane.b32.xlu0 %v1783_v38, %s1993_s7 }
 0x46d   : > { %v933_v23 = vpop.f32.mrf.mxu1 }
 0x470   : > { %1789 = vrot.lane.b32.xlu0 %v1788_v32, %s1994_s8  ;;  %v457_v32 = vsel %vm390_vm2, %v2246_v8, 0.0 }
 0x472   : > { %868 = vadd.xlane.f32.xlu1 %v867_v22  ;;  %v1719_v22 = vld [vmem:[%s2663_s3] sm:$0xff] }
 0x475   : > { %v935_v25 = vpop.f32.mrf.mxu1 }
 0x477   : > { %v1760_v4 = vpop.permute.xlu1 %1759 }
 0x478   : > { %v1762_v0 = vunpack.i.h.bf16 %v1760_v4  ;;  %v447_v16 = vpop.xlane.xlu0 %446  ;;  %v1761_v26 = vunpack.i.l.bf16 %v1760_v4 }
 0x479   : > { %1910 = vrcp.f32 %v447_v16  ;;  %v1159_v16 = vpop.f32.mrf.mxu0 }
 0x47a   : > { %v2515_v55 = vsel %vm336_vm1, %v531_v61, %v1762_v0  ;;  %874 = vadd.xlane.f32.xlu1 %v873_v42 }
 0x47f   : > { %v1911_v40 = vpop.eup %1910  ;;  %v2525_v24 = vpop.permute.xlu1 %1764 }
 0x480   : > { %v530_v2 = vmul.f32 %v1911_v40, %v505_v17  ;;  %v2527_v13 = vpop.xlane.xlu0 %452  ;;  %v1720_v17 = vld [vmem:[%s2663_s3 + $0x8] sm:$0xff] }
 0x481   : > { %1342 = vmatpush.bf16.msra.mxu2 %v1720_v17 }
 0x482   : > { %880 = vadd.xlane.f32.xlu1 %v879_v56  ;;  %v2520_v19 = vsel %vm336_vm1, %v530_v2, %v1761_v26 }
 0x485   : > { %1343 = vmatpush.bf16.msra.mxu2 %v1719_v22 }
 0x488   : > { %v872_v10 = vpop.xlane.xlu0 %871 }
 0x489   : > { %1912 = vrcp.f32 %v872_v10  ;;  %v1767_v10 = vunpack.i.h.bf16 %v2525_v24 }
 0x48a   : > { %889 = vadd.xlane.f32.xlu1 %v888_v54 }
 0x48f   : > { %v1913_v12 = vpop.eup %1912 }
 0x490   : > { %v878_v3 = vpop.xlane.xlu0 %877  ;;  %v957_v31 = vmul.f32 %v1913_v12, %v930_v60 }
 0x49a   : > { %461 = vadd.xlane.f32.xlu0 %v460_v15 }
 0x4ba   : > { %v2529_v37 = vpop.permute.xlu1 %1769 }
 0x4c7   : > { %v884_v35 = vpop.xlane.xlu0 %883 }
 0x4cf   : > { %v887_v4 = vpop.xlane.xlu2 %886 }
 0x4d2   : > { %v938_v63 = vpop.f32.mrf.mxu1 }
 0x4da   : > { %v940_v38 = vpop.f32.mrf.mxu1 }
 0x4e2   : > { %v943_v46 = vpop.f32.mrf.mxu1 }
 0x4e5   : > { %v869_v21 = vpop.xlane.xlu1 %868 }
 0x4e6   : > { %1914 = vrcp.f32 %v869_v21 }
 0x4e7   : > { %1916 = vrcp.f32 %v878_v3 }
 0x4ea   : > { %v945_v40 = vpop.f32.mrf.mxu1 }
 0x4ec   : > { %v1915_v30 = vpop.eup %1914 }
 0x4ed   : > { %v875_v9 = vpop.xlane.xlu1 %874  ;;  %v956_v11 = vmul.f32 %v1915_v30, %v928_v62  ;;  %v1917_v18 = vpop.eup %1916  ;;  %v1757_v62 = vunpack.i.h.bf16 %v2476_v43 }
 0x4ee   : > { %1918 = vrcp.f32 %v875_v9  ;;  %v959_v50 = vmul.f32 %v1917_v18, %v935_v25 }
 0x4ef   : > { %v1773_v34 = vpack.i.bf16 %v957_v31, %v956_v11  ;;  %1920 = vrcp.f32 %v884_v35  ;;  %v1772_v11 = vunpack.i.h.bf16 %v2529_v37  ;;  %v1771_v31 = vunpack.i.l.bf16 %v2529_v37  ;;  %v1785_v35 = vpop.permute.xlu0 %1784 }
 0x4f1   : > { %1774 = vrot.lane.b32.xlu2 %v1773_v34, %s1995_s9 }
 0x4f4   : > { %v1919_v48 = vpop.eup %1918 }
 0x4f5   : > { %v881_v47 = vpop.xlane.xlu1 %880  ;;  %v958_v39 = vmul.f32 %v1919_v48, %v933_v23  ;;  %v1921_v28 = vpop.eup %1920 }
 0x4f6   : > { %1922 = vrcp.f32 %v881_v47  ;;  %v961_v20 = vmul.f32 %v1921_v28, %v940_v38  ;;  %v1787_v38 = vunpack.i.h.bf16 %v1785_v35 }
 0x4f7   : > { %v1778_v52 = vpack.i.bf16 %v959_v50, %v958_v39  ;;  %1924 = vrcp.f32 %v2507_v7  ;;  %v1786_v39 = vunpack.i.l.bf16 %v1785_v35 }
 0x4f9   : > { %1779 = vrot.lane.b32.xlu1 %v1778_v52, %s1995_s9 }
 0x4fc   : > { %v1923_v44 = vpop.eup %1922 }
 0x4fd   : > { %v960_v53 = vmul.f32 %v1923_v44, %v938_v63  ;;  %v890_v57 = vpop.xlane.xlu1 %889  ;;  %v1925_v61 = vpop.eup %1924 }
 0x4fe   : > { %1926 = vrcp.f32 %v890_v57  ;;  %v1177_v8 = vmul.f32 %v1925_v61, %v1159_v16 }
 0x4ff   : > { %v1793_v29 = vpack.i.bf16 %v961_v20, %v960_v53  ;;  %1928 = vrcp.f32 %v2501_v27 }
 0x500   : > { %1930 = vrcp.f32 %v887_v4 }
 0x501   : > { %1794 = vrot.lane.b32.xlu2 %v1793_v29, %s1995_s9  ;;  %1932 = vrcp.f32 %v2490_v36  ;;  %v1766_v36 = vunpack.i.l.bf16 %v2525_v24 }
 0x502   : > { %1934 = vrcp.f32 %v2527_v13 }
 0x504   : > { %v1927_v0 = vpop.eup %1926 }
 0x505   : > { %v1929_v42 = vpop.eup %1928  ;;  %v963_v2 = vmul.f32 %v1927_v0, %v945_v40 }
 0x506   : > { %v1176_v26 = vmul.f32 %v1929_v42, %v1157_v45  ;;  %v1931_v7 = vpop.eup %1930 }
 0x507   : > { %v962_v54 = vmul.f32 %v1931_v7, %v943_v46  ;;  %v1933_v15 = vpop.eup %1932 }
 0x508   : > { %v1808_v56 = vpack.i.bf16 %v1177_v8, %v1176_v26  ;;  %v529_v14 = vmul.f32 %v1933_v15, %v2400_v5  ;;  %v1935_v37 = vpop.eup %1934 }
 0x509   : > { %v1803_v27 = vpack.i.bf16 %v963_v2, %v962_v54 }
 0x50a   : > { %v1275_v23 = vsel %vm336_vm1, %v529_v14, %v1757_v62 }
 0x523   : > { %455 = vadd.xlane.f32.xlu1 %v454_v58 }
 0x52a   : > { %458 = vadd.xlane.f32.xlu2 %v457_v32 }
 0x53c   : > { %1799 = vrot.lane.b32.xlu1 %v1798_v49, %s1993_s7 }
 0x542   : > { %1809 = vrot.lane.b32.xlu2 %v1808_v56, %s1994_s8 }
 0x544   : > { %1804 = vrot.lane.b32.xlu1 %v1803_v27, %s1995_s9 }
 0x54b   : > { %v1775_v41 = vpop.permute.xlu2 %1774 }
 0x54c   : > { %v1777_v49 = vunpack.i.h.bf16 %v1775_v41  ;;  %v1776_v60 = vunpack.i.l.bf16 %v1775_v41 }
 0x54e   : > { %v1283_v21 = vsel %vm1282_vm3, %v2481_v33, %v1776_v60  ;;  %v1284_v25 = vsel %vm1282_vm3, %v1275_v23, %v1777_v49 }
 0x54f   : > { %v1292_v43 = vsel %vm1291_vm4, %v1283_v21, %v1766_v36  ;;  %v1293_v5 = vsel %vm1291_vm4, %v1284_v25, %v1767_v10 }
 0x550   : > { %v1300_v3 = vpack.c.bf16 %v1293_v5, %v1292_v43 }
 0x552   : > { %1697 = vmatmul.msk.bf16.vlgmr.msra.gmra.mxu2 %vm278_vm0, %v1300_v3 }
 0x55b   : > { %v1795_v47 = vpop.permute.xlu2 %1794 }
 0x55c   : > { %v1796_v50 = vunpack.i.l.bf16 %v1795_v47  ;;  %v1797_v20 = vunpack.i.h.bf16 %v1795_v47 }
 0x56b   : > { %v1780_v12 = vpop.permute.xlu1 %1779 }
 0x56c   : > { %v1782_v30 = vunpack.i.h.bf16 %v1780_v12  ;;  %v1781_v9 = vunpack.i.l.bf16 %v1780_v12 }
 0x56e   : > { %v1286_v24 = vsel %vm1282_vm3, %v2515_v55, %v1782_v30  ;;  %v1285_v33 = vsel %vm1282_vm3, %v2520_v19, %v1781_v9  ;;  %v532_v55 = vmul.f32 %v1935_v37, %v2289_v51  ;;  %v1790_v19 = vpop.permute.xlu0 %1789 }
 0x56f   : > { %v1294_v34 = vsel %vm1291_vm4, %v1285_v33, %v1771_v31  ;;  %v1295_v63 = vsel %vm1291_vm4, %v1286_v24, %v1772_v11  ;;  %v1792_v13 = vunpack.i.h.bf16 %v1790_v19  ;;  %v1791_v29 = vunpack.i.l.bf16 %v1790_v19 }
 0x570   : > { %v1301_v18 = vpack.c.bf16 %v1295_v63, %v1294_v34  ;;  %v1278_v28 = vsel %vm336_vm1, %v532_v55, %v1786_v39 }
 0x571   : > { %v1287_v53 = vsel %vm1282_vm3, %v1278_v28, %v1796_v50 }
 0x572   : > { %1698 = vmatmul.msk.bf16.gmra.mxu2 %vm278_vm0, %v1301_v18  ;;  %v1296_v32 = vsel %vm1291_vm4, %v1287_v53, %v1791_v29 }
 0x576   : > { %v462_v45 = vpop.xlane.xlu0 %461 }
 0x596   : > { %v456_v48 = vpop.xlane.xlu1 %455 }
 0x597   : > { %1936 = vrcp.f32 %v456_v48 }
 0x598   : > { %1938 = vrcp.f32 %v462_v45 }
 0x59d   : > { %v1937_v52 = vpop.eup %1936  ;;  %v459_v57 = vpop.xlane.xlu2 %458 }
 0x59e   : > { %v533_v44 = vmul.f32 %v1937_v52, %v2295_v59  ;;  %1940 = vrcp.f32 %v459_v57  ;;  %v1939_v46 = vpop.eup %1938 }
 0x59f   : > { %v535_v8 = vmul.f32 %v1939_v46, %v2312_v6 }
 0x5a0   : > { %v1279_v58 = vsel %vm336_vm1, %v533_v44, %v1787_v38 }
 0x5a1   : > { %v1288_v17 = vsel %vm1282_vm3, %v1279_v58, %v1797_v20 }
 0x5a2   : > { %v1297_v51 = vsel %vm1291_vm4, %v1288_v17, %v1792_v13 }
 0x5a3   : > { %v1302_v22 = vpack.c.bf16 %v1297_v51, %v1296_v32 }
 0x5a4   : > { %v1941_v4 = vpop.eup %1940 }
 0x5a5   : > { %1699 = vmatmul.msk.bf16.gmra.mxu2 %vm278_vm0, %v1302_v22  ;;  %v1810_v16 = vpop.permute.xlu2 %1809  ;;  %v534_v42 = vmul.f32 %v1941_v4, %v2307_v1  ;;  %v2595_v1 = vld [vmem:[%s2664_s4] ss:$0 sm:$0xff] }
 0x5a6   : > { %v1812_v7 = vunpack.i.h.bf16 %v1810_v16  ;;  %v1811_v56 = vunpack.i.l.bf16 %v1810_v16 }
 0x5ae   : > { %v1800_v59 = vpop.permute.xlu1 %1799 }
 0x5af   : > { %v1802_v61 = vunpack.i.h.bf16 %v1800_v59  ;;  %v1801_v0 = vunpack.i.l.bf16 %v1800_v59 }
 0x5b1   : > { %v1280_v54 = vsel %vm336_vm1, %v534_v42, %v1801_v0  ;;  %v1281_v27 = vsel %vm336_vm1, %v535_v8, %v1802_v61 }
 0x5b6   : > { %v1805_v40 = vpop.permute.xlu1 %1804 }
 0x5b7   : > { %v1807_v26 = vunpack.i.h.bf16 %v1805_v40  ;;  %v1806_v2 = vunpack.i.l.bf16 %v1805_v40 }
 0x5b9   : > { %v1289_v15 = vsel %vm1282_vm3, %v1280_v54, %v1806_v2  ;;  %v1290_v62 = vsel %vm1282_vm3, %v1281_v27, %v1807_v26 }
 0x5ba   : > { %v1298_v14 = vsel %vm1291_vm4, %v1289_v15, %v1811_v56  ;;  %v1299_v41 = vsel %vm1291_vm4, %v1290_v62, %v1812_v7 }
 0x5bb   : > { %v1303_v6 = vpack.c.bf16 %v1299_v41, %v1298_v14 }
 0x5bd   : > { %1700 = vmatmul.msk.bf16.gmra.mxu2 %vm278_vm0, %v1303_v6 }
 0x5d5   : > { %v1345_v49 = vpop.f32.mrf.mxu2 }
 0x5d6   : > { %v2598_v60 = vadd.f32 %v2595_v1, %v1345_v49 }
 0x5d8   : > { %v1701_v23 = vmul.f32 -1.442695, %v2598_v60 }
 0x5da   : > { %1942 = vpow2.f32 %v1701_v23 }
 0x5dd   : > { %v1347_v10 = vpop.f32.mrf.mxu2 }
 0x5de   : > { %v2602_v36 = vadd.f32 %v2595_v1, %v1347_v10 }
 0x5e0   : > { %v1943_v21 = vpop.eup %1942  ;;  %v1702_v25 = vmul.f32 -1.442695, %v2602_v36 }
 0x5e1   : > { %v1389_v43 = vadd.f32 1.0, %v1943_v21 }
 0x5e2   : > { %1944 = vpow2.f32 %v1702_v25 }
 0x5e3   : > { %1946 = vrcp.f32 %v1389_v43  ;;  %v1408_v11 = vand.u32 2147483648, %v1389_v43  ;;  %v1406_v24 = vand.u32 2147483647, %v1389_v43  ;;  %vm1402_vm6 = vweird.f32 %v1389_v43 }
 0x5e5   : > { %v1409_v63 = vor.u32 1.1754944e-38, %v1408_v11  ;;  %vm1407_vm8 = vcmp.eq.f32.partialorder %v1406_v24, 8.507059e+37 }
 0x5e8   : > { %v1945_v5 = vpop.eup %1944 }
 0x5e9   : > { %v1947_v3 = vpop.eup %1946  ;;  %v1390_v12 = vadd.f32 1.0, %v1945_v5 }
 0x5ea   : > { %v1398_v30 = vmul.f32 %v1947_v3, %v1389_v43  ;;  %vm1403_vm5 = vweird.f32 %v1947_v3 }
 0x5eb   : > { %1948 = vrcp.f32 %v1390_v12  ;;  %vm1404_vm7 = vmor %vm1402_vm6, %vm1403_vm5  ;;  %v1423_v39 = vand.u32 2147483648, %v1390_v12  ;;  %v1421_v52 = vand.u32 2147483647, %v1390_v12  ;;  %vm1417_vm10 = vweird.f32 %v1390_v12 }
 0x5ec   : > { %v1399_v9 = vsub.f32 1.0, %v1398_v30 }
 0x5ed   : > { %v1424_v28 = vor.u32 1.1754944e-38, %v1423_v39  ;;  %vm1422_vm12 = vcmp.eq.f32.partialorder %v1421_v52, 8.507059e+37 }
 0x5ee   : > { %v1400_v31 = vmul.f32 %v1947_v3, %v1399_v9 }
 0x5f0   : > { %v1401_v33 = vadd.f32 %v1947_v3, %v1400_v31 }
 0x5f1   : > { %v1949_v34 = vpop.eup %1948 }
 0x5f2   : > { %v1405_v18 = vsel %vm1404_vm7, %v1947_v3, %v1401_v33  ;;  %v1413_v35 = vmul.f32 %v1949_v34, %v1390_v12  ;;  %vm1418_vm9 = vweird.f32 %v1949_v34 }
 0x5f3   : > { %v1410_v48 = vsel %vm1407_vm8, %v1409_v63, %v1405_v18  ;;  %vm1419_vm11 = vmor %vm1417_vm10, %vm1418_vm9 }
 0x5f4   : > { %1525 = vrot.lane.b32.xlu1 %v1410_v48, %s1987_s26  ;;  %v1414_v47 = vsub.f32 1.0, %v1413_v35 }
 0x5f5   : > { %v1350_v37 = vpop.f32.mrf.mxu2 }
 0x5f6   : > { %v2607_v50 = vadd.f32 %v2595_v1, %v1350_v37  ;;  %v1415_v55 = vmul.f32 %v1949_v34, %v1414_v47 }
 0x5f8   : > { %v1703_v19 = vmul.f32 -1.442695, %v2607_v50  ;;  %v1416_v38 = vadd.f32 %v1949_v34, %v1415_v55 }
 0x5fa   : > { %1950 = vpow2.f32 %v1703_v19  ;;  %v1420_v44 = vsel %vm1419_vm11, %v1949_v34, %v1416_v38 }
 0x5fb   : > { %v1425_v20 = vsel %vm1422_vm12, %v1424_v28, %v1420_v44 }
 0x5fc   : > { %1527 = vrot.lane.b32.xlu0 %v1425_v20, %s1987_s26 }
 0x5fd   : > { %v1352_v53 = vpop.f32.mrf.mxu2 }
 0x5fe   : > { %v2612_v13 = vadd.f32 %v2595_v1, %v1352_v53 }
 0x600   : > { %v1951_v29 = vpop.eup %1950  ;;  %v1704_v58 = vmul.f32 -1.442695, %v2612_v13 }
 0x601   : > { %v1391_v17 = vadd.f32 1.0, %v1951_v29 }
 0x602   : > { %1952 = vpow2.f32 %v1704_v58 }
 0x603   : > { %1954 = vrcp.f32 %v1391_v17  ;;  %v1438_v59 = vand.u32 2147483648, %v1391_v17  ;;  %v1436_v4 = vand.u32 2147483647, %v1391_v17  ;;  %vm1432_vm14 = vweird.f32 %v1391_v17 }
 0x605   : > { %v1439_v16 = vor.u32 1.1754944e-38, %v1438_v59  ;;  %vm1437_vm1 = vcmp.eq.f32.partialorder %v1436_v4, 8.507059e+37 }
 0x608   : > { %v1953_v32 = vpop.eup %1952 }
 0x609   : > { %v1955_v51 = vpop.eup %1954  ;;  %v1392_v22 = vadd.f32 1.0, %v1953_v32 }
 0x60a   : > { %v1428_v45 = vmul.f32 %v1955_v51, %v1391_v17  ;;  %vm1433_vm13 = vweird.f32 %v1955_v51 }
 0x60b   : > { %1956 = vrcp.f32 %v1392_v22  ;;  %vm1434_vm15 = vmor %vm1432_vm14, %vm1433_vm13  ;;  %v1453_v2 = vand.u32 2147483648, %v1392_v22  ;;  %v1451_v56 = vand.u32 2147483647, %v1392_v22  ;;  %vm1447_vm3 = vweird.f32 %v1392_v22 }
 0x60c   : > { %v1429_v57 = vsub.f32 1.0, %v1428_v45 }
 0x60d   : > { %v1454_v27 = vor.u32 1.1754944e-38, %v1453_v2  ;;  %vm1452_vm5 = vcmp.eq.f32.partialorder %v1451_v56, 8.507059e+37 }
 0x60e   : > { %v1430_v46 = vmul.f32 %v1955_v51, %v1429_v57 }
 0x610   : > { %v1431_v61 = vadd.f32 %v1955_v51, %v1430_v46 }
 0x611   : > { %v1957_v0 = vpop.eup %1956 }
 0x612   : > { %v1435_v8 = vsel %vm1434_vm15, %v1955_v51, %v1431_v61  ;;  %v1443_v42 = vmul.f32 %v1957_v0, %v1392_v22  ;;  %vm1448_vm2 = vweird.f32 %v1957_v0 }
 0x613   : > { %v1440_v40 = vsel %vm1437_vm1, %v1439_v16, %v1435_v8  ;;  %vm1449_vm4 = vmor %vm1447_vm3, %vm1448_vm2 }
 0x614   : > { %1529 = vrot.lane.b32.xlu1 %v1440_v40, %s1987_s26  ;;  %v1444_v26 = vsub.f32 1.0, %v1443_v42 }
 0x616   : > { %v1445_v7 = vmul.f32 %v1957_v0, %v1444_v26 }
 0x618   : > { %v1446_v54 = vadd.f32 %v1957_v0, %v1445_v7 }
 0x61a   : > { %v1450_v15 = vsel %vm1449_vm4, %v1957_v0, %v1446_v54 }
 0x61b   : > { %v1455_v62 = vsel %vm1452_vm5, %v1454_v27, %v1450_v15 }
 0x61c   : > { %1531 = vrot.lane.b32.xlu1 %v1455_v62, %s1987_s26 }
 0x628   : > { %v1355_v14 = vpop.f32.mrf.mxu2 }
 0x629   : > { %v2618_v41 = vadd.f32 %v2595_v1, %v1355_v14 }
 0x62b   : > { %v1705_v6 = vmul.f32 -1.442695, %v2618_v41 }
 0x62d   : > { %1958 = vpow2.f32 %v1705_v6 }
 0x630   : > { %v1357_v49 = vpop.f32.mrf.mxu2 }
 0x631   : > { %v2622_v23 = vadd.f32 %v2595_v1, %v1357_v49 }
 0x633   : > { %v1959_v10 = vpop.eup %1958  ;;  %v1706_v21 = vmul.f32 -1.442695, %v2622_v23 }
 0x634   : > { %v1393_v25 = vadd.f32 1.0, %v1959_v10 }
 0x635   : > { %1960 = vpow2.f32 %v1706_v21 }
 0x636   : > { %1962 = vrcp.f32 %v1393_v25  ;;  %v1468_v11 = vand.u32 2147483648, %v1393_v25  ;;  %v1466_v33 = vand.u32 2147483647, %v1393_v25  ;;  %vm1462_vm7 = vweird.f32 %v1393_v25 }
 0x638   : > { %v1469_v35 = vor.u32 1.1754944e-38, %v1468_v11  ;;  %vm1467_vm9 = vcmp.eq.f32.partialorder %v1466_v33, 8.507059e+37 }
 0x63b   : > { %v1961_v43 = vpop.eup %1960 }
 0x63c   : > { %v1963_v5 = vpop.eup %1962  ;;  %v1394_v3 = vadd.f32 1.0, %v1961_v43 }
 0x63d   : > { %v1458_v12 = vmul.f32 %v1963_v5, %v1393_v25  ;;  %vm1463_vm6 = vweird.f32 %v1963_v5 }
 0x63e   : > { %1964 = vrcp.f32 %v1394_v3  ;;  %vm1464_vm8 = vmor %vm1462_vm7, %vm1463_vm6  ;;  %v1483_v52 = vand.u32 2147483648, %v1394_v3  ;;  %v1481_v28 = vand.u32 2147483647, %v1394_v3  ;;  %vm1477_vm11 = vweird.f32 %v1394_v3 }
 0x63f   : > { %v1459_v30 = vsub.f32 1.0, %v1458_v12 }
 0x640   : > { %v1360_v9 = vpop.f32.mrf.mxu2  ;;  %v1484_v58 = vor.u32 1.1754944e-38, %v1483_v52  ;;  %vm1482_vm13 = vcmp.eq.f32.partialorder %v1481_v28, 8.507059e+37 }
 0x641   : > { %v2626_v31 = vadd.f32 %v2595_v1, %v1360_v9  ;;  %v1460_v24 = vmul.f32 %v1963_v5, %v1459_v30 }
 0x643   : > { %v1707_v34 = vmul.f32 -1.442695, %v2626_v31  ;;  %v1461_v63 = vadd.f32 %v1963_v5, %v1460_v24 }
 0x644   : > { %v1965_v18 = vpop.eup %1964 }
 0x645   : > { %1966 = vpow2.f32 %v1707_v34  ;;  %v1465_v48 = vsel %vm1464_vm8, %v1963_v5, %v1461_v63  ;;  %v1473_v47 = vmul.f32 %v1965_v18, %v1394_v3  ;;  %vm1478_vm10 = vweird.f32 %v1965_v18 }
 0x646   : > { %v1470_v37 = vsel %vm1467_vm9, %v1469_v35, %v1465_v48  ;;  %vm1479_vm12 = vmor %vm1477_vm11, %vm1478_vm10 }
 0x647   : > { %1533 = vrot.lane.b32.xlu0 %v1470_v37, %s1987_s26  ;;  %v1474_v39 = vsub.f32 1.0, %v1473_v47 }
 0x648   : > { %v1362_v55 = vpop.f32.mrf.mxu2 }
 0x649   : > { %v2631_v19 = vadd.f32 %v2595_v1, %v1362_v55  ;;  %v1475_v38 = vmul.f32 %v1965_v18, %v1474_v39 }
 0x64b   : > { %v1967_v44 = vpop.eup %1966  ;;  %v1708_v20 = vmul.f32 -1.442695, %v2631_v19  ;;  %v1476_v53 = vadd.f32 %v1965_v18, %v1475_v38 }
 0x64c   : > { %v1395_v29 = vadd.f32 1.0, %v1967_v44 }
 0x64d   : > { %1968 = vpow2.f32 %v1708_v20  ;;  %v1480_v17 = vsel %vm1479_vm12, %v1965_v18, %v1476_v53 }
 0x64e   : > { %1970 = vrcp.f32 %v1395_v29  ;;  %v1485_v32 = vsel %vm1482_vm13, %v1484_v58, %v1480_v17  ;;  %v1498_v59 = vand.u32 2147483648, %v1395_v29  ;;  %v1496_v4 = vand.u32 2147483647, %v1395_v29 }
 0x64f   : > { %1535 = vrot.lane.b32.xlu2 %v1485_v32, %s1987_s26  ;;  %vm1492_vm15 = vweird.f32 %v1395_v29 }
 0x650   : > { %v1499_v16 = vor.u32 1.1754944e-38, %v1498_v59  ;;  %vm1497_vm2 = vcmp.eq.f32.partialorder %v1496_v4, 8.507059e+37 }
 0x653   : > { %v1969_v1 = vpop.eup %1968 }
 0x654   : > { %v1971_v51 = vpop.eup %1970  ;;  %v1396_v22 = vadd.f32 1.0, %v1969_v1 }
 0x655   : > { %v1488_v45 = vmul.f32 %v1971_v51, %v1395_v29  ;;  %vm1493_vm14 = vweird.f32 %v1971_v51 }
 0x656   : > { %1972 = vrcp.f32 %v1396_v22  ;;  %vm1494_vm1 = vmor %vm1492_vm15, %vm1493_vm14  ;;  %v1513_v2 = vand.u32 2147483648, %v1396_v22  ;;  %v1511_v56 = vand.u32 2147483647, %v1396_v22  ;;  %vm1507_vm4 = vweird.f32 %v1396_v22 }
 0x657   : > { %v1489_v57 = vsub.f32 1.0, %v1488_v45 }
 0x658   : > { %v1514_v27 = vor.u32 1.1754944e-38, %v1513_v2  ;;  %vm1512_vm6 = vcmp.eq.f32.partialorder %v1511_v56, 8.507059e+37 }
 0x659   : > { %v1490_v46 = vmul.f32 %v1971_v51, %v1489_v57 }
 0x65b   : > { %v1491_v61 = vadd.f32 %v1971_v51, %v1490_v46 }
 0x65c   : > { %v1973_v0 = vpop.eup %1972 }
 0x65d   : > { %v1495_v8 = vsel %vm1494_vm1, %v1971_v51, %v1491_v61  ;;  %v1503_v42 = vmul.f32 %v1973_v0, %v1396_v22  ;;  %vm1508_vm3 = vweird.f32 %v1973_v0 }
 0x65e   : > { %v1500_v40 = vsel %vm1497_vm2, %v1499_v16, %v1495_v8  ;;  %vm1509_vm5 = vmor %vm1507_vm4, %vm1508_vm3 }
 0x65f   : > { %1537 = vrot.lane.b32.xlu1 %v1500_v40, %s1987_s26  ;;  %v1504_v26 = vsub.f32 1.0, %v1503_v42 }
 0x661   : > { %v1505_v7 = vmul.f32 %v1973_v0, %v1504_v26 }
 0x663   : > { %v1506_v54 = vadd.f32 %v1973_v0, %v1505_v7 }
 0x665   : > { %v1510_v15 = vsel %vm1509_vm5, %v1973_v0, %v1506_v54 }
 0x666   : > { %v1526_v62 = vpop.permute.xlu1 %1525  ;;  %v1515_v14 = vsel %vm1512_vm6, %v1514_v27, %v1510_v15 }
 0x667   : > { %v1549_v6 = vmul.f32 %v1526_v62, %v2598_v60  ;;  %1539 = vrot.lane.b32.xlu0 %v1515_v14, %s1987_s26 }
 0x669   : > { %1557 = vst.msk [vmem:[%s224_s21] sm:$0xff] %vm278_vm0, %v1549_v6 }
 0x66e   : > { %v1528_v49 = vpop.permute.xlu0 %1527 }
 0x66f   : > { %v1550_v10 = vmul.f32 %v1528_v49, %v2602_v36 }
 0x671   : > { %1558 = vst.msk [vmem:[%s224_s21 + $0x8] sm:$0xff] %vm278_vm0, %v1550_v10 }
 0x686   : > { %v1530_v21 = vpop.permute.xlu1 %1529 }
 0x687   : > { %v1551_v25 = vmul.f32 %v1530_v21, %v2607_v50 }
 0x689   : > { %1559 = vst.msk [vmem:[%s224_s21 + $0x10] sm:$0xff] %vm278_vm0, %v1551_v25 }
 0x68e   : > { %v1532_v43 = vpop.permute.xlu1 %1531 }
 0x68f   : > { %v1552_v5 = vmul.f32 %v1532_v43, %v2612_v13 }
 0x691   : > { %1560 = vst.msk [vmem:[%s224_s21 + $0x18] sm:$0xff] %vm278_vm0, %v1552_v5 }
 0x6a9   : > { %v1536_v60 = vpop.permute.xlu2 %1535 }
 0x6aa   : > { %v1554_v3 = vmul.f32 %v1536_v60, %v2622_v23 }
 0x6ac   : > { %1562 = vst.msk [vmem:[%s224_s21 + $0x28] sm:$0xff] %vm278_vm0, %v1554_v3 }
 0x6b9   : > { %v1534_v12 = vpop.permute.xlu0 %1533 }
 0x6ba   : > { %v1553_v36 = vmul.f32 %v1534_v12, %v2618_v41 }
 0x6bc   : > { %1561 = vst.msk [vmem:[%s224_s21 + $0x20] sm:$0xff] %vm278_vm0, %v1553_v36 }
 0x6d1   : > { %v1538_v30 = vpop.permute.xlu1 %1537 }
 0x6d2   : > { %v1555_v50 = vmul.f32 %v1538_v30, %v2626_v31 }
 0x6d4   : > { %1563 = vst.msk [vmem:[%s224_s21 + $0x30] sm:$0xff] %vm278_vm0, %v1555_v50 }
 0x6d9   : > { %v1540_v9 = vpop.permute.xlu0 %1539 }
 0x6da   : > { %v1556_v13 = vmul.f32 %v1540_v9, %v2631_v19 }
 0x6dc   : > { %1564 = vst.msk [vmem:[%s224_s21 + $0x38] sm:$0xff] %vm278_vm0, %v1556_v13 }
 0x6dd PF: > { %s15_s18 = sadd.s32 1, %s1980_s18  }
 0x6de   : > { %p12_p4 = scmp.ge.s32.totalorder %s15_s18, 4  }
 0x6e0   :  { %14 = sbr.rel (!%p12_p4) target bundleno = 1 (0x1), region = 70 }

</bundles_post_ra>
